<compile_context>
chip_gen: v7x
topology: tpu7x:2x2x1
jax: 0.10.0
libtpu: 0.0.40
codegen_flags: <defaults>
</compile_context>

<pallas_src>
import functools

import jax
import jax.numpy as jnp
from jax.experimental import pallas as pl
from jax.experimental.pallas import tpu as pltpu


def _tcn_conv_stats_kernel(x_ref, w_ref, y_ref, stats_ref, *,
                           kernel_size, stride, pad, t_in, t_out, v):
    """One grid step = one sample: temporal conv as a single stacked-tap MXU
    matmul, plus per-block BatchNorm partial statistics.

    x_ref:     (1, Cin, T*V)        sample in native NCHW element order
    w_ref:     (K*Cin, Cout)        taps stacked k-major / ci-minor
    y_ref:     (1, T_out*V, Cout)   raw conv output (element order = N,T,V,C)
    stats_ref: (1, 2, Cout)         per-block [sum, sum_of_squares]
    """
    cin = x_ref.shape[1]

    # NCHW -> rows=(t, v), cols=Cin done in VMEM with one 2-D XLU transpose;
    # this replaces the two full HBM transpose passes of the previous version.
    xt = x_ref[0].T                                          # (T*V, Cin)

    # Temporal zero padding in VMEM instead of an HBM jnp.pad copy.
    if pad > 0:
        zpad = jnp.zeros((pad * v, cin), jnp.float32)
        xt = jnp.concatenate([zpad, xt, zpad], axis=0)       # ((T+2p)*V, Cin)
    xp = xt.reshape(t_in + 2 * pad, v, cin)                  # layout-preserving split

    # im2col: stack the K taps along the contraction (lane) dim -> one matmul
    # instead of K tiny ones (removes K-1 MXU push/pop latencies).
    span = (t_out - 1) * stride + 1
    taps = [xp[k:k + span:stride].reshape(t_out * v, cin)    # leading-dim merges only
            for k in range(kernel_size)]
    lhs = jnp.concatenate(taps, axis=1)                      # (T_out*V, K*Cin)

    acc = jnp.dot(lhs, w_ref[...],
                  preferred_element_type=jnp.float32)        # (T_out*V, Cout)

    # BN partial statistics; the global reduction + affine fold happen outside
    # the kernel so this grid axis can stay "parallel" (v7x megacore).
    s1 = jnp.sum(acc, axis=0, keepdims=True)                 # (1, Cout)
    s2 = jnp.sum(acc * acc, axis=0, keepdims=True)           # (1, Cout)
    stats_ref[0] = jnp.concatenate([s1, s2], axis=0)         # (2, Cout)

    # Raw conv result; element order already matches (N, T, V, C), so the
    # lane-dense (V*Cout) view used by pass 2 is a free metadata reshape.
    y_ref[0] = acc


def _bn_apply_kernel(y_ref, scale_ref, shift_ref, o_ref):
    """Folded BatchNorm: one FMA per element.  Blocks are 128-lane dense
    (V*Cout), so the final output of the op is written with unmasked
    full-lane stores."""
    o_ref[0] = y_ref[0] * scale_ref[...] + shift_ref[...]


@functools.partial(jax.jit, static_argnames=("stride", "eps"))
def unit_tcn_forward(x_nchw, w_oihw, conv_bias, bn_gamma, bn_beta,
                     *, stride=1, eps=1e-5):
    """unit_tcn.forward with training-mode BN.  Returns the result channels
    last, shape (N, T_out, V, Cout); use unit_tcn_forward_nchw for the exact
    NCHW layout of the PyTorch module."""
    del conv_bias  # a per-channel constant is cancelled exactly by batch-stat BN
    n, cin, t, v = x_nchw.shape
    cout, cin_w, ksize, kw = w_oihw.shape
    assert cin == cin_w and kw == 1
    pad = (ksize - 1) // 2
    t_out = (t + 2 * pad - ksize) // stride + 1

    # Metadata-only reshape of x (no HBM pass) + tiny weight repack.
    x_flat = x_nchw.astype(jnp.float32).reshape(n, cin, t * v)
    w2 = jnp.transpose(w_oihw[..., 0].astype(jnp.float32),
                       (2, 1, 0)).reshape(ksize * cin, cout)      # (K*Cin, Cout)

    cparams = pltpu.CompilerParams(
        dimension_semantics=("parallel",),       # 2 TensorCores on v7x
        vmem_limit_bytes=32 * 1024 * 1024)       # valid budget on v5e/v6e/v7x

    # ---- Pass 1: conv (single stacked-tap matmul per sample) + BN partials.
    # Per-step VMEM ~ (K + 3) x the (Cin, T*V) block + the output block,
    # double buffered -- far under the 32 MiB budget at these shapes.
    y, stats = pl.pallas_call(
        functools.partial(_tcn_conv_stats_kernel, kernel_size=ksize,
                          stride=stride, pad=pad, t_in=t, t_out=t_out, v=v),
        grid=(n,),
        in_specs=[pl.BlockSpec((1, cin, t * v), lambda i: (i, 0, 0)),
                  pl.BlockSpec((ksize * cin, cout), lambda i: (0, 0))],
        out_specs=(pl.BlockSpec((1, t_out * v, cout), lambda i: (i, 0, 0)),
                   pl.BlockSpec((1, 2, cout), lambda i: (i, 0, 0))),
        out_shape=(jax.ShapeDtypeStruct((n, t_out * v, cout), jnp.float32),
                   jax.ShapeDtypeStruct((n, 2, cout), jnp.float32)),
        compiler_params=cparams,
    )(x_flat, w2)

    # ---- Finalize BN stats (tiny (N, 2, Cout) tensor) and fold gamma/beta/eps
    # into one per-channel scale & shift (a single FMA in pass 2).
    m = float(n * t_out * v)
    tot = jnp.sum(stats, axis=0)                      # (2, Cout)
    mean = tot[0] / m
    var = tot[1] / m - mean * mean                    # biased var (training BN)
    scale = bn_gamma.astype(jnp.float32) * jax.lax.rsqrt(var + eps)
    shift = bn_beta.astype(jnp.float32) - mean * scale
    # Tile per-channel vectors across V to match the lane order (v*Cout + co).
    scale_d = jnp.tile(scale, v).reshape(1, v * cout)
    shift_d = jnp.tile(shift, v).reshape(1, v * cout)

    # Free metadata reshape: (N, T_out*V, Cout) -> (N, T_out, V*Cout) so pass 2
    # runs on 128-lane-dense blocks (V*Cout = 128 at the test shape).
    y_dense = y.reshape(n, t_out, v * cout)

    # ---- Pass 2: apply folded BN in place (output aliases the conv buffer).
    out = pl.pallas_call(
        _bn_apply_kernel,
        grid=(n,),
        in_specs=[pl.BlockSpec((1, t_out, v * cout), lambda i: (i, 0, 0)),
                  pl.BlockSpec((1, v * cout), lambda i: (0, 0)),
                  pl.BlockSpec((1, v * cout), lambda i: (0, 0))],
        out_specs=pl.BlockSpec((1, t_out, v * cout), lambda i: (i, 0, 0)),
        out_shape=jax.ShapeDtypeStruct((n, t_out, v * cout), jnp.float32),
        input_output_aliases={0: 0},
        compiler_params=cparams,
    )(y_dense, scale_d, shift_d)

    return out.reshape(n, t_out, v, cout)             # free metadata reshape


def unit_tcn_forward_nchw(x_nchw, w_oihw, conv_bias, bn_gamma, bn_beta,
                          *, stride=1, eps=1e-5):
    """Drop-in NCHW output.  The trailing transpose is compatibility glue only;
    a fused channels-last pipeline should consume unit_tcn_forward directly."""
    y = unit_tcn_forward(x_nchw, w_oihw, conv_bias, bn_gamma, bn_beta,
                         stride=stride, eps=eps)
    return jnp.transpose(y, (0, 3, 1, 2))


def unit_tcn_ref(x_nchw, w_oihw, conv_bias, bn_gamma, bn_beta,
                 *, stride=1, eps=1e-5):
    """Pure-JAX reference (conv_general_dilated + training-mode BN), NCHW."""
    pad = (w_oihw.shape[2] - 1) // 2
    y = jax.lax.conv_general_dilated(
        x_nchw.astype(jnp.float32), w_oihw.astype(jnp.float32),
        window_strides=(stride, 1), padding=((pad, pad), (0, 0)),
        dimension_numbers=('NCHW', 'OIHW', 'NCHW'))
    y = y + conv_bias[None, :, None, None]
    mean = jnp.mean(y, axis=(0, 2, 3), keepdims=True)
    var = jnp.mean((y - mean) ** 2, axis=(0, 2, 3), keepdims=True)
    return (bn_gamma[None, :, None, None] * (y - mean) * jax.lax.rsqrt(var + eps)
            + bn_beta[None, :, None, None])


if __name__ == "__main__":
    # unit_tcn(in_channels=4, out_channels=8, kernel_size=9, stride=1)
    N, C_IN, C_OUT, T, V, K, STRIDE = 2, 4, 8, 16, 16, 9, 1

    key = jax.random.PRNGKey(0)
    kx, kw = jax.random.split(key)

    x = jax.random.normal(kx, (N, C_IN, T, V), dtype=jnp.float32)

    # conv_init: kaiming_normal_(weight, mode='fan_out') -> std = sqrt(2 / (Cout*K*1))
    fan_out = C_OUT * K * 1
    w = jax.random.normal(kw, (C_OUT, C_IN, K, 1), dtype=jnp.float32) * jnp.sqrt(2.0 / fan_out)
    conv_bias = jnp.zeros((C_OUT,), jnp.float32)     # conv bias init to 0
    bn_gamma = jnp.ones((C_OUT,), jnp.float32)       # bn_init(bn, 1)
    bn_beta = jnp.zeros((C_OUT,), jnp.float32)

    out = unit_tcn_forward_nchw(x, w, conv_bias, bn_gamma, bn_beta, stride=STRIDE)
    out = jax.block_until_ready(out)

    ref = unit_tcn_ref(x, w, conv_bias, bn_gamma, bn_beta, stride=STRIDE)
    ref = jax.block_until_ready(ref)

    assert out.shape == (N, C_OUT, T, V), out.shape
    assert jnp.allclose(out, ref, atol=1e-4, rtol=1e-4), float(jnp.max(jnp.abs(out - ref)))
    print("KERNEL_OK")
</pallas_src>

<mosaic_0001>
module attributes {stable_mosaic.version = 11 : i64} {
  func.func @_tcn_conv_stats_kernel(%arg0: i32, %arg1: memref<1x4x256xf32, #tpu.memory_space<vmem>>, %arg2: memref<36x8xf32, #tpu.memory_space<vmem>>, %arg3: memref<1x256x8xf32, #tpu.memory_space<vmem>>, %arg4: memref<1x2x8xf32, #tpu.memory_space<vmem>>) attributes {dimension_semantics = [#tpu.dimension_semantics<parallel>], iteration_bounds = array<i64: 2>, scalar_prefetch = 0 : i64, scratch_operands = 0 : i64, tpu.core_type = #tpu.core_type<tc>, window_params = [{transform_indices = @transform_0, window_bounds = array<i64: 1, 4, 256>}, {pipeline_mode = #tpu.pipeline_mode<synchronous>, transform_indices = @transform_1, window_bounds = array<i64: 36, 8>}, {transform_indices = @transform_2, window_bounds = array<i64: 1, 256, 8>}, {transform_indices = @transform_3, window_bounds = array<i64: 1, 2, 8>}]} {
    %c0 = arith.constant 0 : index
    %c0_0 = arith.constant 0 : index
    %c0_1 = arith.constant 0 : index
    %0 = vector.load %arg1[%c0, %c0_0, %c0_1] : memref<1x4x256xf32, #tpu.memory_space<vmem>>, vector<1x4x256xf32>
    %1 = vector.shape_cast %0 : vector<1x4x256xf32> to vector<4x256xf32>
    %2 = tpu.transpose %1, [1, 0] : vector<4x256xf32> -> vector<256x4xf32>
    %cst = arith.constant 0.000000e+00 : f32
    %3 = vector.broadcast %cst : f32 to vector<64x4xf32>
    %4 = tpu.concatenate %3, %2, %3 in 0 : vector<64x4xf32>, vector<256x4xf32>, vector<64x4xf32> -> vector<384x4xf32>
    %5 = vector.shape_cast %4 : vector<384x4xf32> to vector<24x16x4xf32>
    %6 = vector.extract_strided_slice %5 {offsets = [0, 0, 0], sizes = [16, 16, 4], strides = [1, 1, 1]} : vector<24x16x4xf32> to vector<16x16x4xf32>
    %7 = vector.shape_cast %6 : vector<16x16x4xf32> to vector<256x4xf32>
    %8 = vector.extract_strided_slice %5 {offsets = [1, 0, 0], sizes = [16, 16, 4], strides = [1, 1, 1]} : vector<24x16x4xf32> to vector<16x16x4xf32>
    %9 = vector.shape_cast %8 : vector<16x16x4xf32> to vector<256x4xf32>
    %10 = vector.extract_strided_slice %5 {offsets = [2, 0, 0], sizes = [16, 16, 4], strides = [1, 1, 1]} : vector<24x16x4xf32> to vector<16x16x4xf32>
    %11 = vector.shape_cast %10 : vector<16x16x4xf32> to vector<256x4xf32>
    %12 = vector.extract_strided_slice %5 {offsets = [3, 0, 0], sizes = [16, 16, 4], strides = [1, 1, 1]} : vector<24x16x4xf32> to vector<16x16x4xf32>
    %13 = vector.shape_cast %12 : vector<16x16x4xf32> to vector<256x4xf32>
    %14 = vector.extract_strided_slice %5 {offsets = [4, 0, 0], sizes = [16, 16, 4], strides = [1, 1, 1]} : vector<24x16x4xf32> to vector<16x16x4xf32>
    %15 = vector.shape_cast %14 : vector<16x16x4xf32> to vector<256x4xf32>
    %16 = vector.extract_strided_slice %5 {offsets = [5, 0, 0], sizes = [16, 16, 4], strides = [1, 1, 1]} : vector<24x16x4xf32> to vector<16x16x4xf32>
    %17 = vector.shape_cast %16 : vector<16x16x4xf32> to vector<256x4xf32>
    %18 = vector.extract_strided_slice %5 {offsets = [6, 0, 0], sizes = [16, 16, 4], strides = [1, 1, 1]} : vector<24x16x4xf32> to vector<16x16x4xf32>
    %19 = vector.shape_cast %18 : vector<16x16x4xf32> to vector<256x4xf32>
    %20 = vector.extract_strided_slice %5 {offsets = [7, 0, 0], sizes = [16, 16, 4], strides = [1, 1, 1]} : vector<24x16x4xf32> to vector<16x16x4xf32>
    %21 = vector.shape_cast %20 : vector<16x16x4xf32> to vector<256x4xf32>
    %22 = vector.extract_strided_slice %5 {offsets = [8, 0, 0], sizes = [16, 16, 4], strides = [1, 1, 1]} : vector<24x16x4xf32> to vector<16x16x4xf32>
    %23 = vector.shape_cast %22 : vector<16x16x4xf32> to vector<256x4xf32>
    %24 = tpu.concatenate %7, %9, %11, %13, %15, %17, %19, %21, %23 in 1 : vector<256x4xf32>, vector<256x4xf32>, vector<256x4xf32>, vector<256x4xf32>, vector<256x4xf32>, vector<256x4xf32>, vector<256x4xf32>, vector<256x4xf32>, vector<256x4xf32> -> vector<256x36xf32>
    %c0_2 = arith.constant 0 : index
    %c0_3 = arith.constant 0 : index
    %25 = vector.load %arg2[%c0_2, %c0_3] : memref<36x8xf32, #tpu.memory_space<vmem>>, vector<36x8xf32>
    %cst_4 = arith.constant dense<0.000000e+00> : vector<256x8xf32>
    %26 = tpu.matmul %24, %25, %cst_4 {dimension_numbers = #tpu.dot_dimension_numbers<[1], [0], [0], [1], [0, 0, 1, 1], [], []>} : vector<256x36xf32>, vector<36x8xf32>, vector<256x8xf32> -> vector<256x8xf32>
    %cst_5 = arith.constant dense<0.000000e+00> : vector<8xf32>
    %27 = vector.multi_reduction <add>, %26, %cst_5 [0] : vector<256x8xf32> to vector<8xf32>
    %28 = vector.shape_cast %27 : vector<8xf32> to vector<1x8xf32>
    %29 = arith.mulf %26, %26 : vector<256x8xf32>
    %cst_6 = arith.constant dense<0.000000e+00> : vector<8xf32>
    %30 = vector.multi_reduction <add>, %29, %cst_6 [0] : vector<256x8xf32> to vector<8xf32>
    %31 = vector.shape_cast %30 : vector<8xf32> to vector<1x8xf32>
    %32 = tpu.concatenate %28, %31 in 0 : vector<1x8xf32>, vector<1x8xf32> -> vector<2x8xf32>
    %c0_7 = arith.constant 0 : index
    %c0_8 = arith.constant 0 : index
    %c0_9 = arith.constant 0 : index
    %33 = vector.load %arg4[%c0_7, %c0_8, %c0_9] : memref<1x2x8xf32, #tpu.memory_space<vmem>>, vector<1x2x8xf32>
    %34 = vector.shape_cast %33 : vector<1x2x8xf32> to vector<2x8xf32>
    %35 = vector.shape_cast %32 : vector<2x8xf32> to vector<1x2x8xf32>
    tpu.vector_store %arg4[%c0_7, %c0_8, %c0_9], %35 {strides = array<i32>} : memref<1x2x8xf32, #tpu.memory_space<vmem>>, vector<1x2x8xf32>,
    %c0_10 = arith.constant 0 : index
    %c0_11 = arith.constant 0 : index
    %c0_12 = arith.constant 0 : index
    %36 = vector.load %arg3[%c0_10, %c0_11, %c0_12] : memref<1x256x8xf32, #tpu.memory_space<vmem>>, vector<1x256x8xf32>
    %37 = vector.shape_cast %36 : vector<1x256x8xf32> to vector<256x8xf32>
    %38 = vector.shape_cast %26 : vector<256x8xf32> to vector<1x256x8xf32>
    tpu.vector_store %arg3[%c0_10, %c0_11, %c0_12], %38 {strides = array<i32>} : memref<1x256x8xf32, #tpu.memory_space<vmem>>, vector<1x256x8xf32>,
    return
  }
  func.func @transform_0(%arg0: i32) -> (i32, i32, i32) {
    %c0_i32 = arith.constant 0 : i32
    %c0_i32_0 = arith.constant 0 : i32
    %c0_i32_1 = arith.constant 0 : i32
    return %arg0, %c0_i32, %c0_i32_0 : i32, i32, i32
  }
  func.func @transform_1(%arg0: i32) -> (i32, i32) {
    %c0_i32 = arith.constant 0 : i32
    %c0_i32_0 = arith.constant 0 : i32
    %c0_i32_1 = arith.constant 0 : i32
    return %c0_i32, %c0_i32_0 : i32, i32
  }
  func.func @transform_2(%arg0: i32) -> (i32, i32, i32) {
    %c0_i32 = arith.constant 0 : i32
    %c0_i32_0 = arith.constant 0 : i32
    %c0_i32_1 = arith.constant 0 : i32
    return %arg0, %c0_i32, %c0_i32_0 : i32, i32, i32
  }
  func.func @transform_3(%arg0: i32) -> (i32, i32, i32) {
    %c0_i32 = arith.constant 0 : i32
    %c0_i32_0 = arith.constant 0 : i32
    %c0_i32_1 = arith.constant 0 : i32
    return %arg0, %c0_i32, %c0_i32_0 : i32, i32, i32
  }
}

module attributes {stable_mosaic.version = 11 : i64} {
  func.func @_bn_apply_kernel(%arg0: i32, %arg1: memref<1x16x128xf32, #tpu.memory_space<vmem>>, %arg2: memref<1x128xf32, #tpu.memory_space<vmem>>, %arg3: memref<1x128xf32, #tpu.memory_space<vmem>>, %arg4: memref<1x16x128xf32, #tpu.memory_space<vmem>>) attributes {dimension_semantics = [#tpu.dimension_semantics<parallel>], iteration_bounds = array<i64: 2>, scalar_prefetch = 0 : i64, scratch_operands = 0 : i64, tpu.core_type = #tpu.core_type<tc>, window_params = [{transform_indices = @transform_0, window_bounds = array<i64: 1, 16, 128>}, {pipeline_mode = #tpu.pipeline_mode<synchronous>, transform_indices = @transform_1, window_bounds = array<i64: 1, 128>}, {pipeline_mode = #tpu.pipeline_mode<synchronous>, transform_indices = @transform_2, window_bounds = array<i64: 1, 128>}, {transform_indices = @transform_3, window_bounds = array<i64: 1, 16, 128>}]} {
    %c0 = arith.constant 0 : index
    %c0_0 = arith.constant 0 : index
    %c0_1 = arith.constant 0 : index
    %0 = vector.load %arg1[%c0, %c0_0, %c0_1] : memref<1x16x128xf32, #tpu.memory_space<vmem>>, vector<1x16x128xf32>
    %1 = vector.shape_cast %0 : vector<1x16x128xf32> to vector<16x128xf32>
    %c0_2 = arith.constant 0 : index
    %c0_3 = arith.constant 0 : index
    %2 = vector.load %arg2[%c0_2, %c0_3] : memref<1x128xf32, #tpu.memory_space<vmem>>, vector<1x128xf32>
    %3 = vector.broadcast %2 : vector<1x128xf32> to vector<16x128xf32>
    %4 = arith.mulf %1, %3 : vector<16x128xf32>
    %c0_4 = arith.constant 0 : index
    %c0_5 = arith.constant 0 : index
    %5 = vector.load %arg3[%c0_4, %c0_5] : memref<1x128xf32, #tpu.memory_space<vmem>>, vector<1x128xf32>
    %6 = vector.broadcast %5 : vector<1x128xf32> to vector<16x128xf32>
    %7 = arith.addf %4, %6 : vector<16x128xf32>
    %c0_6 = arith.constant 0 : index
    %c0_7 = arith.constant 0 : index
    %c0_8 = arith.constant 0 : index
    %8 = vector.load %arg4[%c0_6, %c0_7, %c0_8] : memref<1x16x128xf32, #tpu.memory_space<vmem>>, vector<1x16x128xf32>
    %9 = vector.shape_cast %8 : vector<1x16x128xf32> to vector<16x128xf32>
    %10 = vector.shape_cast %7 : vector<16x128xf32> to vector<1x16x128xf32>
    tpu.vector_store %arg4[%c0_6, %c0_7, %c0_8], %10 {strides = array<i32>} : memref<1x16x128xf32, #tpu.memory_space<vmem>>, vector<1x16x128xf32>,
    return
  }
  func.func @transform_0(%arg0: i32) -> (i32, i32, i32) {
    %c0_i32 = arith.constant 0 : i32
    %c0_i32_0 = arith.constant 0 : i32
    %c0_i32_1 = arith.constant 0 : i32
    return %arg0, %c0_i32, %c0_i32_0 : i32, i32, i32
  }
  func.func @transform_1(%arg0: i32) -> (i32, i32) {
    %c0_i32 = arith.constant 0 : i32
    %c0_i32_0 = arith.constant 0 : i32
    %c0_i32_1 = arith.constant 0 : i32
    return %c0_i32, %c0_i32_0 : i32, i32
  }
  func.func @transform_2(%arg0: i32) -> (i32, i32) {
    %c0_i32 = arith.constant 0 : i32
    %c0_i32_0 = arith.constant 0 : i32
    %c0_i32_1 = arith.constant 0 : i32
    return %c0_i32, %c0_i32_0 : i32, i32
  }
  func.func @transform_3(%arg0: i32) -> (i32, i32, i32) {
    %c0_i32 = arith.constant 0 : i32
    %c0_i32_0 = arith.constant 0 : i32
    %c0_i32_1 = arith.constant 0 : i32
    return %arg0, %c0_i32, %c0_i32_0 : i32, i32, i32
  }
}

</mosaic_0001>

<bundles_post_ra>
// kernel: tile.18
= control target key start
LH: loop header
LB: loop body
LE: loop exit
PB: predicated region body
PF: predicated region fallthrough
CT: control target
= control target key end

     0   :  { %s28_s0 = inlined_call_operand.vmem [shape: f32[8], index: 0, kind: input, shape index: {}]   ;;  %s29_s1 = inlined_call_operand.vmem [shape: f32[16,8], index: 1, kind: output, shape index: {}]  }
   0x1   :  { %v4_v0 = vld [vmem:[%s28_s0] ss:$0 sm:$0xff] }
   0x2   :  { %5 = vst [vmem:[%s29_s1] sm:$0xff] %v4_v0  ;;  %8 = vst [vmem:[%s29_s1 + $0x8] sm:$0xff] %v4_v0 }

// kernel: tile.19
= control target key start
LH: loop header
LB: loop body
LE: loop exit
PB: predicated region body
PF: predicated region fallthrough
CT: control target
= control target key end

     0   :  { %s131_s10 = smov 120   ;;  %s132_s11 = smov 104   ;;  %vm3_vm0 = vcmask 64512   ;;  %vm9_vm1 = vcmask 1048512   ;;  %vm15_vm2 = vcmask 982912   ;;  %vm21_vm3 = vcmask 917312   ;;  %s207_s0 = inlined_call_operand.vmem [shape: f32[16,8], index: 0, kind: input, shape index: {}]   ;;  %s208_s1 = inlined_call_operand.vmem [shape: f32[1,128], index: 1, kind: output, shape index: {}]  }
   0x1   :  { %v101_v0 = vld [vmem:[%s207_s0 + $0xf] sm:$0x1]   ;;  %v103_v1 = vld [vmem:[%s207_s0 + $0xd] sm:$0x1]   ;;  %v102_v2 = vld [vmem:[%s207_s0 + $0xe] sm:$0x1]  }
   0x2   :  { %7 = vrot.lane.b32.xlu0 %v101_v0, %s131_s10  ;;  %19 = vrot.lane.b32.xlu1 %v103_v1, %s132_s11  ;;  %v104_v3 = vld [vmem:[%s207_s0 + $0xc] sm:$0x1]   ;;  %s133_s16 = smov 112   ;;  %s134_s17 = smov 96   ;;  %v105_v4 = vld [vmem:[%s207_s0 + $0xb] sm:$0x1]  }
   0x3   :  { %v106_v5 = vld [vmem:[%s207_s0 + $0xa] sm:$0x1]   ;;  %v2_v6 = vld [vmem:[%s207_s0] sm:$0x1]   ;;  %s135_s24 = smov 88   ;;  %s136_s25 = smov 80  }
   0x4   :  { %4 = vst.msk [vmem:[#allocation0] sm:$0x1] %vm3_vm0, %v2_v6   ;;  %v107_v7 = vld [vmem:[%s207_s0 + $0x9] sm:$0x1]   ;;  %v108_v8 = vld [vmem:[%s207_s0 + $0x8] sm:$0x1]  }
   0x5   :  { %s137_s30 = smov 72   ;;  %s138_s2 = smov 64   ;;  %v109_v9 = vld [vmem:[%s207_s0 + $0x7] sm:$0x1]   ;;  %v110_v10 = vld [vmem:[%s207_s0 + $0x6] sm:$0x1]  }
   0x6   :  { %13 = vrot.lane.b32.xlu0 %v102_v2, %s133_s16  ;;  %25 = vrot.lane.b32.xlu1 %v104_v3, %s134_s17  ;;  %s139_s7 = smov 56   ;;  %s140_s8 = smov 48   ;;  %v111_v11 = vld [vmem:[%s207_s0 + $0x5] sm:$0x1]   ;;  %v112_v12 = vld [vmem:[%s207_s0 + $0x4] sm:$0x1]  }
   0x7   :  { %s141_s13 = smov 40   ;;  %s142_s14 = smov 32   ;;  %v113_v13 = vld [vmem:[%s207_s0 + $0x3] sm:$0x1]   ;;  %v114_v14 = vld [vmem:[%s207_s0 + $0x2] sm:$0x1]  }
   0x8   :  { %s143_s19 = smov 24   ;;  %s144_s20 = smov 16   ;;  %v115_v15 = vld [vmem:[%s207_s0 + $0x1] sm:$0x1]   ;;  %vm27_vm4 = vcmask 851712   ;;  %vm33_vm5 = vcmask 786112  }
   0x9   :  { %s145_s0 = smov 8   ;;  %vm39_vm6 = vcmask 720512   ;;  %vm45_vm7 = vcmask 654912   ;;  %vm51_vm8 = vcmask 589312   ;;  %vm57_vm9 = vcmask 523712  }
   0xa   :  { %31 = vrot.lane.b32.xlu0 %v105_v4, %s135_s24  ;;  %37 = vrot.lane.b32.xlu1 %v106_v5, %s136_s25  ;;  %vm63_vm10 = vcmask 458112   ;;  %vm69_vm11 = vcmask 392512   ;;  %vm75_vm12 = vcmask 326912   ;;  %vm81_vm13 = vcmask 261312  }
   0xb   :  { %vm87_vm14 = vcmask 195712   ;;  %vm93_vm15 = vcmask 130112  }
   0xe   :  { %43 = vrot.lane.b32.xlu0 %v107_v7, %s137_s30  ;;  %49 = vrot.lane.b32.xlu1 %v108_v8, %s138_s2 }
  0x12   :  { %55 = vrot.lane.b32.xlu0 %v109_v9, %s139_s7  ;;  %61 = vrot.lane.b32.xlu1 %v110_v10, %s140_s8 }
  0x16   :  { %67 = vrot.lane.b32.xlu0 %v111_v11, %s141_s13  ;;  %73 = vrot.lane.b32.xlu1 %v112_v12, %s142_s14 }
  0x1a   :  { %79 = vrot.lane.b32.xlu0 %v113_v13, %s143_s19  ;;  %85 = vrot.lane.b32.xlu1 %v114_v14, %s144_s20 }
  0x1e   :  { %91 = vrot.lane.b32.xlu0 %v115_v15, %s145_s0 }
  0x74   :  { %v8_v16 = vpop.permute.xlu0 %7   ;;  %v20_v17 = vpop.permute.xlu1 %19  }
  0x75   :  { %10 = vst.msk [vmem:[#allocation0] sm:$0x1] %vm9_vm1, %v8_v16  }
  0x78   :  { %v14_v18 = vpop.permute.xlu0 %13   ;;  %v26_v19 = vpop.permute.xlu1 %25  }
  0x79   :  { %16 = vst.msk [vmem:[#allocation0] sm:$0x1] %vm15_vm2, %v14_v18  }
  0x7a   :  { %22 = vst.msk [vmem:[#allocation0] sm:$0x1] %vm21_vm3, %v20_v17  }
  0x7b   :  { %28 = vst.msk [vmem:[#allocation0] sm:$0x1] %vm27_vm4, %v26_v19  }
  0x7c   :  { %v32_v20 = vpop.permute.xlu0 %31   ;;  %v38_v21 = vpop.permute.xlu1 %37  }
  0x7d   :  { %34 = vst.msk [vmem:[#allocation0] sm:$0x1] %vm33_vm5, %v32_v20  }
  0x7e   :  { %40 = vst.msk [vmem:[#allocation0] sm:$0x1] %vm39_vm6, %v38_v21  }
  0x80   :  { %v44_v22 = vpop.permute.xlu0 %43   ;;  %v50_v23 = vpop.permute.xlu1 %49  }
  0x81   :  { %46 = vst.msk [vmem:[#allocation0] sm:$0x1] %vm45_vm7, %v44_v22  }
  0x82   :  { %52 = vst.msk [vmem:[#allocation0] sm:$0x1] %vm51_vm8, %v50_v23  }
  0x84   :  { %v56_v24 = vpop.permute.xlu0 %55   ;;  %v62_v25 = vpop.permute.xlu1 %61  }
  0x85   :  { %58 = vst.msk [vmem:[#allocation0] sm:$0x1] %vm57_vm9, %v56_v24  }
  0x86   :  { %64 = vst.msk [vmem:[#allocation0] sm:$0x1] %vm63_vm10, %v62_v25  }
  0x88   :  { %v68_v26 = vpop.permute.xlu0 %67   ;;  %v74_v27 = vpop.permute.xlu1 %73  }
  0x89   :  { %70 = vst.msk [vmem:[#allocation0] sm:$0x1] %vm69_vm11, %v68_v26  }
  0x8a   :  { %76 = vst.msk [vmem:[#allocation0] sm:$0x1] %vm75_vm12, %v74_v27  }
  0x8c   :  { %v80_v28 = vpop.permute.xlu0 %79   ;;  %v86_v29 = vpop.permute.xlu1 %85  }
  0x8d   :  { %82 = vst.msk [vmem:[#allocation0] sm:$0x1] %vm81_vm13, %v80_v28  }
  0x8e   :  { %88 = vst.msk [vmem:[#allocation0] sm:$0x1] %vm87_vm14, %v86_v29  }
  0x90   :  { %v92_v30 = vpop.permute.xlu0 %91  }
  0x91   :  { %94 = vst.msk [vmem:[#allocation0] sm:$0x1] %vm93_vm15, %v92_v30  }
  0x98   :  { %v98_v31 = vld [vmem:[#allocation0] sm:$0x1] }
  0x99   :  { %100 = vst [vmem:[%s208_s1] sm:$0x1] %v98_v31 }

// kernel: unit_tcn_forward.3
= control target key start
LH: loop header
LB: loop body
LE: loop exit
PB: predicated region body
PF: predicated region fallthrough
CT: control target
= control target key end

     0   :  { %s275_s12 = smov 0   ;;  %s311_s0 = inlined_call_operand.vmem [shape: f32[2,16,128], index: 0, kind: input, shape index: {}, may-alias: {0,3}]   ;;  %s312_s1 = inlined_call_operand.vmem [shape: f32[1,128], index: 1, kind: input, shape index: {}]   ;;  %s313_s2 = inlined_call_operand.vmem [shape: f32[1,128], index: 2, kind: input, shape index: {}]   ;;  %s314_s3 = inlined_call_operand.vmem [shape: f32[2,16,128], index: 3, kind: output, shape index: {}, may-alias: {0,3}]  }
   0x1 LB: > { %s248_s13 = sadd.s32 4294967295, %s277_s12   ;;  %p252_p0 = scmp.ge.s32.totalorder %s277_s12, 1  ;;  %s277_s12 = sphi %s275_s12, %s13_s12  }
   0x2   : > { %p137_p1 = scmp.lt.s32.totalorder %s277_s12, 3 }
   0x4   : > { %p138_p2 = pnand %p252_p0, %p137_p1 }
   0x5   : > { %p161_p3 = scmp.lt.s32.totalorder (!%p138_p2), %s248_s13, 1  ;;  %v257_v0 = vld [vmem:[%s312_s1] ss:$0 sm:$0xff] (!%p138_p2) }
   0x6   : > { %141 = sbr.rel (%p138_p2) target bundleno = 22 (0x16), region = 32  ;;  %v258_v3 = vld [vmem:[%s313_s2] ss:$0 sm:$0xff] (!%p138_p2) }
   0xd   : > { %s316_s13 = smov (!%p161_p3, %s248_s13), 1 }
   0xe   : > { %s261_s14 = sshll.u32 %s316_s13, 4 }
   0xf   : > { %s165_s19 = scalar_lea.vmem %s311_s0, %s261_s14  ;;  %s170_s24 = scalar_lea.vmem %s314_s3, %s261_s14 }
  0x10   : > { %v171_v1 = vld [vmem:[%s165_s19] sm:$0xff]  ;;  %v172_v2 = vld [vmem:[%s165_s19 + $0x8] sm:$0xff] }
  0x11   : > { %v180_v4 = vmul.f32 %v257_v0, %v171_v1  ;;  %v181_v5 = vmul.f32 %v257_v0, %v172_v2 }
  0x13   : > { %v189_v6 = vadd.f32 %v258_v3, %v180_v4  ;;  %v190_v7 = vadd.f32 %v258_v3, %v181_v5 }
  0x15   : > { %191 = vst [vmem:[%s170_s24] sm:$0xff] %v189_v6  ;;  %192 = vst [vmem:[%s170_s24 + $0x8] sm:$0xff] %v190_v7 }
  0x16 PF: > { %s13_s12 = sadd.s32 1, %s277_s12  }
  0x17   : > { %p10_p4 = scmp.ge.s32.totalorder %s13_s12, 4  }
  0x19   :  { %12 = sbr.rel (!%p10_p4) target bundleno = 1 (0x1), region = 62 }

// kernel: unit_tcn_forward.2
= control target key start
LH: loop header
LB: loop body
LE: loop exit
PB: predicated region body
PF: predicated region fallthrough
CT: control target
= control target key end

     0   :  { %s2065_s12 = smov 0   ;;  %s3474_s0 = inlined_call_operand.vmem [shape: f32[2,4,256], index: 0, kind: input, shape index: {}]   ;;  %s3475_s1 = inlined_call_operand.vmem [shape: f32[36,8], index: 1, kind: input, shape index: {}]   ;;  %s3476_s2 = inlined_call_operand.vmem [shape: f32[2,256,8], index: 2, kind: output, shape index: {0}]   ;;  %s3477_s3 = inlined_call_operand.vmem [shape: f32[2,2,8], index: 3, kind: output, shape index: {1}]  }
   0x1 LB: > { %s1854_s13 = sadd.s32 4294967295, %s2034_s12   ;;  %p1858_p0 = scmp.ge.s32.totalorder %s2034_s12, 1  ;;  %s2034_s12 = sphi %s2065_s12, %s14_s12  }
   0x2   : > { %p140_p1 = scmp.lt.s32.totalorder %s2034_s12, 3 }
   0x4   : > { %p141_p2 = pnand %p1858_p0, %p140_p1 }
   0x6   : > { %144 = sbr.rel (%p141_p2) target bundleno = 1086 (0x43e), region = 28 }
   0xd   : > { %p168_p3 = scmp.lt.s32.totalorder %s1854_s13, 1  ;;  %v3478_v0 = vmov 0.0   ;;  %s2037_s14 = smov 4   ;;  %vm1333_vm0 = vcmask 1043456   ;;  %vm976_vm1 = vcmask 31744   ;;  %vm1004_vm2 = vcmask 64512  }
   0xe   : > { %277 = vrot.lane.b32.xlu1 %v3478_v0, %s2037_s14  ;;  %s2038_s19 = smov 8   ;;  %s2039_s20 = smov 16   ;;  %vm1034_vm3 = vcmask 97280   ;;  %vm1066_vm4 = vcmask 130048   ;;  %vm1099_vm5 = vcmask 162816   ;;  %vm1132_vm6 = vcmask 195584  }
   0xf   : > { %s3621_s13 = smov (!%p168_p3, %s1854_s13), 1  ;;  %s2040_s21 = smov 20   ;;  %vm1165_vm7 = vcmask 228352   ;;  %vm1198_vm8 = vcmask 261120   ;;  %vm1236_vm9 = vcmask 293888   ;;  %vm1732_vm10 = vcmask 1040384  }
  0x10   : > { %s1899_s15 = sshll.u32 %s3621_s13, 3  ;;  %s2041_s22 = smov 24   ;;  %vm1734_vm11 = vcmask 58368  }
  0x11   : > { %s172_s18 = scalar_lea.vmem %s3474_s0, %s1899_s15  ;;  %s2042_s23 = smov 12  }
  0x12   : > { %v182_v1 = vld [vmem:[%s172_s18] sm:$0xff]  ;;  %s2043_s24 = smov 28   ;;  %s2044_s25 = smov 32  }
  0x13   : > { %186 = vxpose.xlu0.b32.start.end [1/1] (short) %v182_v1, 128  ;;  %v184_v2 = vcombine.high %v182_v1, %v182_v1  ;;  %v1231_v1 = vld [vmem:[%s3475_s1] sm:$0xff]  ;;  %s1900_s9 = sshll.u32 %s3621_s13, 8  ;;  %s1863_s15 = sshll.u32 %s3621_s13, 1 }
  0x14   : > { %s181_s18 = scalar_lea.vmem %s3477_s3, %s1863_s15 }
  0x50   : > { %218 = vxpose.xlu0.b32.start.end [1/1] (short) %v184_v2, 128  ;;  %v1232_v2 = vld [vmem:[%s3475_s1 + $0x8] sm:$0xff] }
  0x80   : > { %v2223_v30 = vpop.permute.xlu1 %277 }
  0x93   : > { %v2081_v3 = vpop.trf.xlu0 }
  0x94   : > { %3493 = vst [vmem:[#allocation2_spill] sm:$0xff] %v2081_v3  ;;  %279 = vrot.lane.b32.xlu1 %v2081_v3, %s2037_s14 }
  0x97   : > { %v2085_v4 = vpop.trf.xlu0 }
  0x98   : > { %360 = vrot.lane.b32.xlu1 %v3478_v0, %s2038_s19 }
  0x9b   : > { %v2089_v5 = vpop.trf.xlu0 }
  0x9c   : > { %3494 = vst [vmem:[#allocation3_spill] sm:$0xff] %v2089_v5  ;;  %362 = vrot.lane.b32.xlu1 %v2081_v3, %s2038_s19 }
  0x9f   : > { %v2093_v6 = vpop.trf.xlu0 }
  0xa0   : > { %3495 = vst [vmem:[#allocation4_spill] sm:$0xff] %v2093_v6  ;;  %281 = vrot.lane.b32.xlu1 %v2085_v4, %s2037_s14 }
  0xa3   : > { %v2097_v7 = vpop.trf.xlu0 }
  0xa4   : > { %3496 = vst [vmem:[#allocation5_spill] sm:$0xff] %v2097_v7  ;;  %364 = vrot.lane.b32.xlu1 %v2085_v4, %s2038_s19 }
  0xa7   : > { %v2101_v8 = vpop.trf.xlu0 }
  0xa8   : > { %3497 = vst [vmem:[#allocation6_spill] sm:$0xff] %v2101_v8 }
  0xab   : > { %v2103_v9 = vpop.trf.xlu0 }
  0xac   : > { %3498 = vst [vmem:[#allocation7_spill] sm:$0xff] %v2103_v9 }
  0xaf   : > { %v2105_v10 = vpop.trf.xlu0 }
  0xb0   : > { %3499 = vst [vmem:[#allocation8_spill] sm:$0xff] %v2105_v10 }
  0xb3   : > { %v2107_v11 = vpop.trf.xlu0 }
  0xb4   : > { %3500 = vst [vmem:[#allocation9_spill] sm:$0xff] %v2107_v11 }
  0xb7   : > { %v2109_v12 = vpop.trf.xlu0 }
  0xb8   : > { %3501 = vst [vmem:[#allocation10_spill] sm:$0xff] %v2109_v12 }
  0xbb   : > { %v2111_v13 = vpop.trf.xlu0 }
  0xbf   : > { %v2113_v14 = vpop.trf.xlu0 }
  0xc0   : > { %3502 = vst [vmem:[#allocation11_spill] sm:$0xff] %v2113_v14 }
  0xc3   : > { %v2115_v15 = vpop.trf.xlu0 }
  0xc7   : > { %v2117_v16 = vpop.trf.xlu0 }
  0xc8   : > { %3503 = vst [vmem:[#allocation12_spill] sm:$0xff] %v2117_v16 }
  0xcb   : > { %v2119_v17 = vpop.trf.xlu0 }
  0xcf   : > { %v2121_v18 = vpop.trf.xlu0 }
  0xd3   : > { %v2123_v19 = vpop.trf.xlu0 }
  0xd4   : > { %311 = vrot.lane.b32.xlu0 %v2123_v19, %s2037_s14 }
  0xd7   : > { %v2127_v20 = vpop.trf.xlu0 }
  0xd8   : > { %392 = vrot.lane.b32.xlu0 %v2121_v18, %s2038_s19  ;;  %313 = vrot.lane.b32.xlu1 %v2127_v20, %s2037_s14 }
  0xdb   : > { %v2133_v21 = vpop.trf.xlu0 }
  0xdc   : > { %396 = vrot.lane.b32.xlu0 %v2127_v20, %s2038_s19  ;;  %283 = vrot.lane.b32.xlu1 %v2089_v5, %s2037_s14 }
  0xdf   : > { %v2139_v22 = vpop.trf.xlu0 }
  0xe0   : > { %366 = vrot.lane.b32.xlu1 %v2089_v5, %s2038_s19  ;;  %400 = vrot.lane.b32.xlu0 %v2139_v22, %s2038_s19 }
  0xe3   : > { %v2145_v23 = vpop.trf.xlu0 }
  0xe4   : > { %315 = vrot.lane.b32.xlu1 %v2133_v21, %s2037_s14 }
  0xe7   : > { %v2149_v24 = vpop.trf.xlu0 }
  0xe8   : > { %3504 = vst [vmem:[#allocation13_spill] sm:$0xff] %v2149_v24  ;;  %285 = vrot.lane.b32.xlu1 %v2093_v6, %s2037_s14  ;;  %404 = vrot.lane.b32.xlu0 %v2149_v24, %s2038_s19 }
  0xeb   : > { %v2155_v25 = vpop.trf.xlu0 }
  0xec   : > { %368 = vrot.lane.b32.xlu1 %v2093_v6, %s2038_s19 }
  0xef   : > { %v2159_v26 = vpop.trf.xlu0 }
  0xf0   : > { %317 = vrot.lane.b32.xlu1 %v2139_v22, %s2037_s14  ;;  %408 = vrot.lane.b32.xlu0 %v2159_v26, %s2038_s19 }
  0xf3   : > { %v2201_v27 = vpop.trf.xlu0 }
  0xf4   : > { %287 = vrot.lane.b32.xlu1 %v2097_v7, %s2037_s14  ;;  %544 = vrot.lane.b32.xlu0 %v2081_v3, %s2039_s20 }
  0xf7   : > { %v2211_v28 = vpop.trf.xlu0 }
  0xf8   : > { %370 = vrot.lane.b32.xlu1 %v2097_v7, %s2038_s19  ;;  %640 = vrot.lane.b32.xlu0 %v2089_v5, %s2040_s21 }
  0xfb   : > { %v2217_v29 = vpop.trf.xlu0 }
  0xfc   : > { %319 = vrot.lane.b32.xlu1 %v2145_v23, %s2037_s14  ;;  %733 = vrot.lane.b32.xlu0 %v2097_v7, %s2041_s22 }
  0xff   : > { %v2229_v31 = vpop.trf.xlu0 }
 0x100   : > { %289 = vrot.lane.b32.xlu1 %v2101_v8, %s2037_s14  ;;  %735 = vrot.lane.b32.xlu0 %v2101_v8, %s2041_s22 }
 0x103   : > { %v2237_v33 = vpop.trf.xlu0 }
 0x104   : > { %372 = vrot.lane.b32.xlu1 %v2101_v8, %s2038_s19  ;;  %453 = vrot.lane.b32.xlu0 %v2085_v4, %s2042_s23 }
 0x106   : > { %v2235_v32 = vpop.permute.xlu1 %279 }
 0x107   : > { %v2249_v35 = vpop.trf.xlu0 }
 0x108   : > { %321 = vrot.lane.b32.xlu1 %v2149_v24, %s2037_s14  ;;  %822 = vrot.lane.b32.xlu0 %v2105_v10, %s2043_s24 }
 0x10a   : > { %v2243_v34 = vpop.permute.xlu1 %360 }
 0x10b   : > { %v2257_v37 = vpop.trf.xlu0 }
 0x10c   : > { %291 = vrot.lane.b32.xlu1 %v2103_v9, %s2037_s14  ;;  %550 = vrot.lane.b32.xlu0 %v2093_v6, %s2039_s20 }
 0x10e   : > { %v2255_v36 = vpop.permute.xlu1 %362 }
 0x10f   : > { %v2269_v39 = vpop.trf.xlu0 }
 0x110   : > { %374 = vrot.lane.b32.xlu1 %v2103_v9, %s2038_s19  ;;  %903 = vrot.lane.b32.xlu0 %v2109_v12, %s2044_s25 }
 0x112   : > { %v2263_v38 = vpop.permute.xlu1 %281 }
 0x114   : > { %323 = vrot.lane.b32.xlu1 %v2155_v25, %s2037_s14  ;;  %737 = vrot.lane.b32.xlu0 %v2103_v9, %s2041_s22 }
 0x116   : > { %v2275_v40 = vpop.permute.xlu1 %364 }
 0x118   : > { %293 = vrot.lane.b32.xlu1 %v2105_v10, %s2037_s14  ;;  %739 = vrot.lane.b32.xlu0 %v2105_v10, %s2041_s22 }
 0x11c   : > { %376 = vrot.lane.b32.xlu1 %v2105_v10, %s2038_s19  ;;  %457 = vrot.lane.b32.xlu0 %v2093_v6, %s2042_s23 }
 0x120   : > { %826 = vrot.lane.b32.xlu0 %v2109_v12, %s2043_s24  ;;  %325 = vrot.lane.b32.xlu1 %v2159_v26, %s2037_s14 }
 0x124   : > { %554 = vrot.lane.b32.xlu0 %v2101_v8, %s2039_s20  ;;  %295 = vrot.lane.b32.xlu1 %v2107_v11, %s2037_s14 }
 0x128   : > { %907 = vrot.lane.b32.xlu0 %v2113_v14, %s2044_s25  ;;  %327 = vrot.lane.b32.xlu1 %v2201_v27, %s2037_s14 }
 0x12c   : > { %741 = vrot.lane.b32.xlu0 %v2107_v11, %s2041_s22  ;;  %297 = vrot.lane.b32.xlu1 %v2109_v12, %s2037_s14 }
 0x130   : > { %743 = vrot.lane.b32.xlu0 %v2109_v12, %s2041_s22  ;;  %329 = vrot.lane.b32.xlu1 %v2211_v28, %s2037_s14 }
 0x134   : > { %461 = vrot.lane.b32.xlu0 %v2101_v8, %s2042_s23  ;;  %299 = vrot.lane.b32.xlu1 %v2111_v13, %s2037_s14 }
 0x138   : > { %830 = vrot.lane.b32.xlu0 %v2113_v14, %s2043_s24  ;;  %301 = vrot.lane.b32.xlu1 %v2113_v14, %s2037_s14 }
 0x13c   : > { %558 = vrot.lane.b32.xlu0 %v2105_v10, %s2039_s20  ;;  %303 = vrot.lane.b32.xlu1 %v2115_v15, %s2037_s14 }
 0x140   : > { %911 = vrot.lane.b32.xlu0 %v2117_v16, %s2044_s25  ;;  %305 = vrot.lane.b32.xlu1 %v2117_v16, %s2037_s14 }
 0x144   : > { %745 = vrot.lane.b32.xlu0 %v2111_v13, %s2041_s22  ;;  %307 = vrot.lane.b32.xlu1 %v2119_v17, %s2037_s14 }
 0x146   : > { %v2277_v41 = vpop.permute.xlu0 %311 }
 0x147   : > { %3505 = vst [vmem:[#allocation14_spill] sm:$0xff] %v2277_v41 }
 0x148   : > { %747 = vrot.lane.b32.xlu0 %v2113_v14, %s2041_s22  ;;  %309 = vrot.lane.b32.xlu1 %v2121_v18, %s2037_s14  ;;  %s3129_s14 = scalar_lea.vmem %s3476_s2, %s1900_s9 }
 0x14a   : > { %v2283_v42 = vpop.permute.xlu1 %313  ;;  %v2285_v43 = vpop.permute.xlu0 %392 }
 0x14b   : > { %3506 = vst [vmem:[#allocation15_spill] sm:$0xff] %v2283_v42  ;;  %3507 = vst [vmem:[#allocation16_spill] sm:$0xff] %v2285_v43 }
 0x14c   : > { %465 = vrot.lane.b32.xlu0 %v2105_v10, %s2042_s23  ;;  %378 = vrot.lane.b32.xlu1 %v2107_v11, %s2038_s19 }
 0x14e   : > { %v2291_v44 = vpop.permute.xlu1 %283  ;;  %v2297_v45 = vpop.permute.xlu0 %396 }
 0x14f   : > { %3508 = vst [vmem:[#allocation17_spill] sm:$0xff] %v2291_v44  ;;  %3509 = vst [vmem:[#allocation18_spill] sm:$0xff] %v2297_v45 }
 0x150   : > { %834 = vrot.lane.b32.xlu0 %v2117_v16, %s2043_s24  ;;  %380 = vrot.lane.b32.xlu1 %v2109_v12, %s2038_s19 }
 0x152   : > { %v2299_v46 = vpop.permute.xlu1 %366  ;;  %v2307_v48 = vpop.permute.xlu0 %400 }
 0x153   : > { %3511 = vst [vmem:[#allocation20_spill] sm:$0xff] %v2307_v48 }
 0x154   : > { %562 = vrot.lane.b32.xlu0 %v2109_v12, %s2039_s20  ;;  %382 = vrot.lane.b32.xlu1 %v2111_v13, %s2038_s19 }
 0x156   : > { %v2305_v47 = vpop.permute.xlu1 %315 }
 0x157   : > { %3510 = vst [vmem:[#allocation19_spill] sm:$0xff] %v2305_v47 }
 0x158   : > { %915 = vrot.lane.b32.xlu0 %v2121_v18, %s2044_s25  ;;  %384 = vrot.lane.b32.xlu1 %v2113_v14, %s2038_s19 }
 0x15a   : > { %v2313_v49 = vpop.permute.xlu1 %285  ;;  %v2319_v50 = vpop.permute.xlu0 %404 }
 0x15b   : > { %3512 = vst [vmem:[#allocation21_spill] sm:$0xff] %v2319_v50 }
 0x15c   : > { %749 = vrot.lane.b32.xlu0 %v2115_v15, %s2041_s22  ;;  %386 = vrot.lane.b32.xlu1 %v2115_v15, %s2038_s19 }
 0x15e   : > { %v2321_v51 = vpop.permute.xlu1 %368 }
 0x160   : > { %751 = vrot.lane.b32.xlu0 %v2117_v16, %s2041_s22  ;;  %388 = vrot.lane.b32.xlu1 %v2117_v16, %s2038_s19 }
 0x162   : > { %v2327_v52 = vpop.permute.xlu1 %317  ;;  %v2329_v53 = vpop.permute.xlu0 %408 }
 0x163   : > { %3513 = vst [vmem:[#allocation22_spill] sm:$0xff] %v2327_v52  ;;  %3514 = vst [vmem:[#allocation23_spill] sm:$0xff] %v2329_v53  ;;  %v1996_v53 = vpack.c.bf16 %v1232_v2, %v1231_v1  ;;  %v1234_v1 = vld [vmem:[%s3475_s1 + $0x18] sm:$0xff] }
 0x164   : > { %469 = vrot.lane.b32.xlu0 %v2109_v12, %s2042_s23  ;;  %390 = vrot.lane.b32.xlu1 %v2119_v17, %s2038_s19 }
 0x165   : > { %1997 = vmatprep.subr.bf16.mxu0 %v1996_v53  ;;  %2004 = vmatprep.subr.bf16.mxu1 %v1996_v53 }
 0x166   : > { %v2335_v54 = vpop.permute.xlu1 %287  ;;  %v2337_v55 = vpop.permute.xlu0 %544  ;;  %1999 = vmatpush3.bf16.msra.mxu0 %v1996_v53  ;;  %2007 = vmatpush3.bf16.msra.mxu1 %v1996_v53 }
 0x167   : > { %3515 = vst [vmem:[#allocation24_spill] sm:$0xff] %v2335_v54 }
 0x168   : > { %838 = vrot.lane.b32.xlu0 %v2121_v18, %s2043_s24  ;;  %394 = vrot.lane.b32.xlu1 %v2123_v19, %s2038_s19 }
 0x16a   : > { %v2343_v56 = vpop.permute.xlu1 %370  ;;  %v2345_v57 = vpop.permute.xlu0 %640 }
 0x16b   : > { %3516 = vst [vmem:[#allocation25_spill] sm:$0xff] %v2343_v56 }
 0x16c   : > { %566 = vrot.lane.b32.xlu0 %v2113_v14, %s2039_s20  ;;  %398 = vrot.lane.b32.xlu1 %v2133_v21, %s2038_s19 }
 0x16e   : > { %v2351_v58 = vpop.permute.xlu1 %319  ;;  %v2353_v59 = vpop.permute.xlu0 %733 }
 0x16f   : > { %3517 = vst [vmem:[#allocation26_spill] sm:$0xff] %v2351_v58 }
 0x170   : > { %919 = vrot.lane.b32.xlu0 %v2127_v20, %s2044_s25  ;;  %402 = vrot.lane.b32.xlu1 %v2145_v23, %s2038_s19 }
 0x172   : > { %v2359_v60 = vpop.permute.xlu1 %289  ;;  %v2361_v61 = vpop.permute.xlu0 %735 }
 0x173   : > { %3518 = vst [vmem:[#allocation27_spill] sm:$0xff] %v2359_v60 }
 0x174   : > { %753 = vrot.lane.b32.xlu0 %v2119_v17, %s2041_s22  ;;  %406 = vrot.lane.b32.xlu1 %v2155_v25, %s2038_s19 }
 0x176   : > { %v2367_v62 = vpop.permute.xlu1 %372  ;;  %v2369_v63 = vpop.permute.xlu0 %453 }
 0x177   : > { %3519 = vst [vmem:[#allocation28_spill] sm:$0xff] %v2367_v62 }
 0x178   : > { %755 = vrot.lane.b32.xlu0 %v2121_v18, %s2041_s22  ;;  %449 = vrot.lane.b32.xlu1 %v3478_v0, %s2042_s23  ;;  %v1233_v0 = vld [vmem:[%s3475_s1 + $0x10] sm:$0xff] }
 0x179   : > { %v2000_v2 = vpack.c.bf16 %v1234_v1, %v1233_v0  ;;  %v1235_v0 = vld [vmem:[%s3475_s1 + $0x20] sm:$0xf] }
 0x17a   : > { %v2381_v58 = vpop.permute.xlu1 %321  ;;  %v2383_v47 = vpop.permute.xlu0 %822 }
 0x17b   : > { %3520 = vst [vmem:[#allocation29_spill] sm:$0xff] %v2381_v58  ;;  %2001 = vmatprep.subr.bf16.mxu0 %v2000_v2  ;;  %2005 = vmatprep.subr.bf16.mxu1 %v2000_v2 }
 0x17c   : > { %473 = vrot.lane.b32.xlu0 %v2113_v14, %s2042_s23  ;;  %546 = vrot.lane.b32.xlu1 %v2085_v4, %s2039_s20 }
 0x17d   : > { %2003 = vmatpush3.bf16.msra.mxu0 %v2000_v2  ;;  %2008 = vmatpush3.bf16.msra.mxu1 %v2000_v2 }
 0x17e   : > { %v2395_v58 = vpop.permute.xlu1 %291  ;;  %v2397_v50 = vpop.permute.xlu0 %550  ;;  %1946 = vmatprep.subr.msk.mxu0 %vm1333_vm0, %v1235_v0  ;;  %2006 = vmatprep.subr.msk.mxu1 %vm1333_vm0, %v1235_v0 }
 0x17f   : > { %3521 = vst [vmem:[#allocation30_spill] sm:$0xff] %v2395_v58 }
 0x180   : > { %842 = vrot.lane.b32.xlu0 %v2127_v20, %s2043_s24  ;;  %642 = vrot.lane.b32.xlu1 %v2093_v6, %s2040_s21 }
 0x181   : > { %1947 = vmatpush3.msk.msra.mxu0 %vm1333_vm0, %v1235_v0  ;;  %2009 = vmatpush3.msk.msra.mxu1 %vm1333_vm0, %v1235_v0 }
 0x182   : > { %v2403_v52 = vpop.permute.xlu1 %374  ;;  %v2405_v41 = vpop.permute.xlu0 %903 }
 0x183   : > { %3522 = vst [vmem:[#allocation31_spill] sm:$0xff] %v2403_v52 }
 0x184   : > { %570 = vrot.lane.b32.xlu0 %v2117_v16, %s2039_s20  ;;  %451 = vrot.lane.b32.xlu1 %v2081_v3, %s2042_s23 }
 0x186   : > { %v2414_v53 = vpop.permute.xlu1 %323  ;;  %v2416_v1 = vpop.permute.xlu0 %737 }
 0x187   : > { %3523 = vst [vmem:[#allocation32_spill] sm:$0xff] %v2414_v53 }
 0x188   : > { %820 = vrot.lane.b32.xlu1 %v2103_v9, %s2043_s24  ;;  %923 = vrot.lane.b32.xlu0 %v2139_v22, %s2044_s25 }
 0x18a   : > { %v2422_v2 = vpop.permute.xlu1 %293  ;;  %v2424_v48 = vpop.permute.xlu0 %739 }
 0x18b   : > { %3524 = vst [vmem:[#allocation33_spill] sm:$0xff] %v2422_v2 }
 0x18c   : > { %548 = vrot.lane.b32.xlu1 %v2089_v5, %s2039_s20  ;;  %757 = vrot.lane.b32.xlu0 %v2123_v19, %s2041_s22 }
 0x18e   : > { %v2430_v0 = vpop.permute.xlu1 %376  ;;  %v2432_v53 = vpop.permute.xlu0 %457 }
 0x18f   : > { %3525 = vst [vmem:[#allocation34_spill] sm:$0xff] %v2430_v0 }
 0x190   : > { %901 = vrot.lane.b32.xlu1 %v2107_v11, %s2044_s25  ;;  %759 = vrot.lane.b32.xlu0 %v2127_v20, %s2041_s22 }
 0x192   : > { %v2438_v42 = vpop.permute.xlu1 %325  ;;  %v2440_v45 = vpop.permute.xlu0 %826 }
 0x193   : > { %3526 = vst [vmem:[#allocation35_spill] sm:$0xff] %v2438_v42 }
 0x194   : > { %644 = vrot.lane.b32.xlu1 %v2097_v7, %s2040_s21  ;;  %477 = vrot.lane.b32.xlu0 %v2117_v16, %s2042_s23 }
 0x196   : > { %v2446_v43 = vpop.permute.xlu1 %295  ;;  %v2448_v58 = vpop.permute.xlu0 %554 }
 0x197   : > { %3527 = vst [vmem:[#allocation36_spill] sm:$0xff] %v2446_v43 }
 0x198   : > { %646 = vrot.lane.b32.xlu1 %v2101_v8, %s2040_s21  ;;  %846 = vrot.lane.b32.xlu0 %v2139_v22, %s2043_s24 }
 0x19a   : > { %v2454_v2 = vpop.permute.xlu1 %327  ;;  %v2456_v42 = vpop.permute.xlu0 %907 }
 0x19b   : > { %3528 = vst [vmem:[#allocation37_spill] sm:$0xff] %v2454_v2 }
 0x19c   : > { %455 = vrot.lane.b32.xlu1 %v2089_v5, %s2042_s23  ;;  %574 = vrot.lane.b32.xlu0 %v2121_v18, %s2039_s20 }
 0x19e   : > { %v2462_v52 = vpop.permute.xlu1 %297  ;;  %v2464_v43 = vpop.permute.xlu0 %741 }
 0x19f   : > { %3529 = vst [vmem:[#allocation38_spill] sm:$0xff] %v2462_v52 }
 0x1a0   : > { %824 = vrot.lane.b32.xlu1 %v2107_v11, %s2043_s24  ;;  %927 = vrot.lane.b32.xlu0 %v2149_v24, %s2044_s25 }
 0x1a2   : > { %v2470_v8 = vpop.permute.xlu1 %329  ;;  %v2472_v2 = vpop.permute.xlu0 %743 }
 0x1a3   : > { %3530 = vst [vmem:[#allocation39_spill] sm:$0xff] %v2470_v8 }
 0x1a4   : > { %552 = vrot.lane.b32.xlu1 %v2097_v7, %s2039_s20  ;;  %761 = vrot.lane.b32.xlu0 %v2133_v21, %s2041_s22 }
 0x1a6   : > { %v2478_v5 = vpop.permute.xlu1 %299  ;;  %v2480_v52 = vpop.permute.xlu0 %461 }
 0x1a7   : > { %3531 = vst [vmem:[#allocation40_spill] sm:$0xff] %v2478_v5 }
 0x1a8   : > { %905 = vrot.lane.b32.xlu1 %v2111_v13, %s2044_s25  ;;  %763 = vrot.lane.b32.xlu0 %v2139_v22, %s2041_s22 }
 0x1aa   : > { %v2486_v54 = vpop.permute.xlu1 %301  ;;  %v2488_v8 = vpop.permute.xlu0 %830 }
 0x1ab   : > { %3532 = vst [vmem:[#allocation41_spill] sm:$0xff] %v2486_v54 }
 0x1ac   : > { %648 = vrot.lane.b32.xlu1 %v2103_v9, %s2040_s21  ;;  %481 = vrot.lane.b32.xlu0 %v2121_v18, %s2042_s23 }
 0x1ae   : > { %v2494_v0 = vpop.permute.xlu1 %303  ;;  %v2496_v5 = vpop.permute.xlu0 %558 }
 0x1af   : > { %3533 = vst [vmem:[#allocation42_spill] sm:$0xff] %v2494_v0 }
 0x1b0   : > { %650 = vrot.lane.b32.xlu1 %v2105_v10, %s2040_s21  ;;  %850 = vrot.lane.b32.xlu0 %v2149_v24, %s2043_s24 }
 0x1b2   : > { %v2502_v6 = vpop.permute.xlu1 %305  ;;  %v2504_v54 = vpop.permute.xlu0 %911 }
 0x1b3   : > { %3534 = vst [vmem:[#allocation43_spill] sm:$0xff] %v2502_v6 }
 0x1b4   : > { %459 = vrot.lane.b32.xlu1 %v2097_v7, %s2042_s23  ;;  %578 = vrot.lane.b32.xlu0 %v2127_v20, %s2039_s20 }
 0x1b6   : > { %v2510_v60 = vpop.permute.xlu1 %307  ;;  %v2512_v0 = vpop.permute.xlu0 %745 }
 0x1b7   : > { %3535 = vst [vmem:[#allocation44_spill] sm:$0xff] %v2510_v60 }
 0x1b8   : > { %828 = vrot.lane.b32.xlu1 %v2111_v13, %s2043_s24  ;;  %931 = vrot.lane.b32.xlu0 %v2159_v26, %s2044_s25 }
 0x1ba   : > { %v2518_v10 = vpop.permute.xlu1 %309  ;;  %v2520_v6 = vpop.permute.xlu0 %747 }
 0x1bb   : > { %3536 = vst [vmem:[#allocation45_spill] sm:$0xff] %v2518_v10 }
 0x1bc   : > { %556 = vrot.lane.b32.xlu1 %v2103_v9, %s2039_s20  ;;  %765 = vrot.lane.b32.xlu0 %v2145_v23, %s2041_s22 }
 0x1be   : > { %v2526_v7 = vpop.permute.xlu1 %378  ;;  %v2528_v60 = vpop.permute.xlu0 %465 }
 0x1bf   : > { %3537 = vst [vmem:[#allocation46_spill] sm:$0xff] %v2526_v7  ;;  %3538 = vst [vmem:[#allocation47_spill] sm:$0xff] %v2528_v60 }
 0x1c0   : > { %909 = vrot.lane.b32.xlu1 %v2115_v15, %s2044_s25  ;;  %767 = vrot.lane.b32.xlu0 %v2149_v24, %s2041_s22 }
 0x1c2   : > { %v2534_v56 = vpop.permute.xlu1 %380  ;;  %v2540_v10 = vpop.permute.xlu0 %834 }
 0x1c3   : > { %3539 = vst [vmem:[#allocation48_spill] sm:$0xff] %v2534_v56 }
 0x1c4   : > { %652 = vrot.lane.b32.xlu1 %v2107_v11, %s2040_s21  ;;  %485 = vrot.lane.b32.xlu0 %v2127_v20, %s2042_s23 }
 0x1c6   : > { %v2542_v3 = vpop.permute.xlu1 %382  ;;  %v2550_v44 = vpop.permute.xlu0 %562 }
 0x1c7   : > { %3540 = vst [vmem:[#allocation49_spill] sm:$0xff] %v2542_v3  ;;  %3542 = vst [vmem:[#allocation51_spill] sm:$0xff] %v2550_v44 }
 0x1c8   : > { %654 = vrot.lane.b32.xlu1 %v2109_v12, %s2040_s21  ;;  %854 = vrot.lane.b32.xlu0 %v2159_v26, %s2043_s24 }
 0x1ca   : > { %v2548_v7 = vpop.permute.xlu1 %384  ;;  %v2562_v12 = vpop.permute.xlu0 %915 }
 0x1cb   : > { %3541 = vst [vmem:[#allocation50_spill] sm:$0xff] %v2548_v7 }
 0x1cc   : > { %463 = vrot.lane.b32.xlu1 %v2103_v9, %s2042_s23  ;;  %582 = vrot.lane.b32.xlu0 %v2139_v22, %s2039_s20 }
 0x1ce   : > { %v2556_v56 = vpop.permute.xlu1 %386  ;;  %v2572_v7 = vpop.permute.xlu0 %749 }
 0x1cf   : > { %3543 = vst [vmem:[#allocation52_spill] sm:$0xff] %v2556_v56  ;;  %3546 = vst [vmem:[#allocation55_spill] sm:$0xff] %v2572_v7 }
 0x1d0   : > { %832 = vrot.lane.b32.xlu1 %v2115_v15, %s2043_s24  ;;  %935 = vrot.lane.b32.xlu0 %v2211_v28, %s2044_s25 }
 0x1d2   : > { %v2564_v3 = vpop.permute.xlu1 %388 }
 0x1d3   : > { %3544 = vst [vmem:[#allocation53_spill] sm:$0xff] %v2564_v3  ;;  %v2584_v3 = vpop.permute.xlu0 %751 }
 0x1d4   : > { %560 = vrot.lane.b32.xlu1 %v2107_v11, %s2039_s20  ;;  %769 = vrot.lane.b32.xlu0 %v2155_v25, %s2041_s22  ;;  %3548 = vst [vmem:[#allocation57_spill] sm:$0xff] %v2584_v3 }
 0x1d6   : > { %v2570_v9 = vpop.permute.xlu1 %390 }
 0x1d7   : > { %3545 = vst [vmem:[#allocation54_spill] sm:$0xff] %v2570_v9  ;;  %v2594_v7 = vpop.permute.xlu0 %469 }
 0x1d8   : > { %913 = vrot.lane.b32.xlu1 %v2119_v17, %s2044_s25  ;;  %771 = vrot.lane.b32.xlu0 %v2159_v26, %s2041_s22  ;;  %3551 = vst [vmem:[#allocation60_spill] sm:$0xff] %v2594_v7 }
 0x1da   : > { %v2578_v56 = vpop.permute.xlu1 %394 }
 0x1db   : > { %3547 = vst [vmem:[#allocation56_spill] sm:$0xff] %v2578_v56 }
 0x1dc   : > { %656 = vrot.lane.b32.xlu1 %v2111_v13, %s2040_s21  ;;  %489 = vrot.lane.b32.xlu0 %v2139_v22, %s2042_s23 }
 0x1de   : > { %v2586_v44 = vpop.permute.xlu1 %398 }
 0x1df   : > { %3549 = vst [vmem:[#allocation58_spill] sm:$0xff] %v2586_v44  ;;  %v2606_v44 = vpop.permute.xlu0 %838 }
 0x1e0   : > { %658 = vrot.lane.b32.xlu1 %v2113_v14, %s2040_s21  ;;  %858 = vrot.lane.b32.xlu0 %v2211_v28, %s2043_s24  ;;  %3553 = vst [vmem:[#allocation62_spill] sm:$0xff] %v2606_v44  ;;  %v2626_v44 = vsel %vm976_vm1, 0.0, %v2223_v30 }
 0x1e1   : > { %v1005_v3 = vsel %vm1004_vm2, %v2626_v44, %v2243_v34 }
 0x1e2   : > { %v2592_v9 = vpop.permute.xlu1 %402 }
 0x1e3   : > { %3550 = vst [vmem:[#allocation59_spill] sm:$0xff] %v2592_v9 }
 0x1e4   : > { %467 = vrot.lane.b32.xlu1 %v2107_v11, %s2042_s23  ;;  %586 = vrot.lane.b32.xlu0 %v2149_v24, %s2039_s20  ;;  %v2612_v11 = vpop.permute.xlu0 %566 }
 0x1e5   : > { %3554 = vst [vmem:[#allocation63_spill] sm:$0xff] %v2612_v11 }
 0x1e6   : > { %v2600_v56 = vpop.permute.xlu1 %406 }
 0x1e7   : > { %3552 = vst [vmem:[#allocation61_spill] sm:$0xff] %v2600_v56 }
 0x1e8   : > { %836 = vrot.lane.b32.xlu1 %v2119_v17, %s2043_s24  ;;  %939 = vrot.lane.b32.xlu0 %v2229_v31, %s2044_s25  ;;  %v2622_v7 = vpop.permute.xlu0 %919 }
 0x1e9   : > { %3555 = vst [vmem:[#allocation64_spill] sm:$0xff] %v2622_v7 }
 0x1ea   : > { %v450_v14 = vpop.permute.xlu1 %449 }
 0x1eb   : > { %v1035_v60 = vsel %vm1034_vm3, %v1005_v3, %v450_v14 }
 0x1ec   : > { %564 = vrot.lane.b32.xlu1 %v2111_v13, %s2039_s20  ;;  %773 = vrot.lane.b32.xlu0 %v2201_v27, %s2041_s22  ;;  %v1067_v62 = vsel %vm1066_vm4, %v1035_v60, %v2337_v55 }
 0x1ee   : > { %v547_v9 = vpop.permute.xlu1 %546 }
 0x1ef   : > { %v1068_v7 = vsel %vm1066_vm4, %v1035_v60, %v547_v9  ;;  %v1100_v9 = vsel %vm1099_vm5, %v1067_v62, %v2345_v57 }
 0x1f0   : > { %917 = vrot.lane.b32.xlu1 %v2123_v19, %s2044_s25  ;;  %775 = vrot.lane.b32.xlu0 %v2211_v28, %s2041_s22  ;;  %v1133_v55 = vsel %vm1132_vm6, %v1100_v9, %v2353_v59 }
 0x1f2   : > { %v643_v56 = vpop.permute.xlu1 %642 }
 0x1f3   : > { %v1101_v34 = vsel %vm1099_vm5, %v1068_v7, %v643_v56 }
 0x1f4   : > { %660 = vrot.lane.b32.xlu1 %v2115_v15, %s2040_s21  ;;  %493 = vrot.lane.b32.xlu0 %v2149_v24, %s2042_s23  ;;  %v2637_v24 = vpop.permute.xlu0 %753  ;;  %v1134_v14 = vsel %vm1132_vm6, %v1101_v34, %v2361_v61 }
 0x1f5   : > { %v1167_v56 = vsel %vm1165_vm7, %v1134_v14, %v2383_v47  ;;  %v1037_v14 = vsel %vm1034_vm3, %v1005_v3, %v2369_v63 }
 0x1f6   : > { %v452_v11 = vpop.permute.xlu1 %451  ;;  %v1200_v62 = vsel %vm1198_vm8, %v1167_v56, %v2405_v41  ;;  %v1070_v9 = vsel %vm1066_vm4, %v1037_v14, %v2397_v50 }
 0x1f8   : > { %662 = vrot.lane.b32.xlu1 %v2117_v16, %s2040_s21  ;;  %862 = vrot.lane.b32.xlu0 %v2229_v31, %s2043_s24  ;;  %v2654_v7 = vpop.permute.xlu0 %755 }
 0x1fa   : > { %v821_v30 = vpop.permute.xlu1 %820 }
 0x1fb   : > { %v1166_v60 = vsel %vm1165_vm7, %v1133_v55, %v821_v30 }
 0x1fc   : > { %471 = vrot.lane.b32.xlu1 %v2111_v13, %s2042_s23  ;;  %590 = vrot.lane.b32.xlu0 %v2159_v26, %s2039_s20  ;;  %v2670_v47 = vpop.permute.xlu0 %473 }
 0x1fe   : > { %v549_v16 = vpop.permute.xlu1 %548 }
 0x200   : > { %840 = vrot.lane.b32.xlu1 %v2123_v19, %s2043_s24  ;;  %943 = vrot.lane.b32.xlu0 %v2249_v35, %s2044_s25  ;;  %v2678_v34 = vpop.permute.xlu0 %842 }
 0x202   : > { %v902_v57 = vpop.permute.xlu1 %901 }
 0x203   : > { %v1199_v61 = vsel %vm1198_vm8, %v1166_v60, %v902_v57  ;;  %v1036_v57 = vsel %vm1034_vm3, %v1005_v3, %v452_v11 }
 0x204   : > { %568 = vrot.lane.b32.xlu1 %v2115_v15, %s2039_s20  ;;  %1948 = vmatprep.mubr.msk.f32.mxu0 %vm1236_vm9, %v1199_v61  ;;  %v2690_v56 = vpop.permute.xlu0 %570  ;;  %v1069_v61 = vsel %vm1066_vm4, %v1036_v57, %v549_v16 }
 0x205   : > { %777 = vrot.lane.b32.xlu0 %v2217_v29, %s2041_s22  ;;  %1949 = vmatmul.mubr.msk.f32.vlgmr.msra.gmra.mrb[0].mxu0 %vm1236_vm9, %v1200_v62 }
 0x206   : > { %v645_v59 = vpop.permute.xlu1 %644 }
 0x207   : > { %v1102_v63 = vsel %vm1099_vm5, %v1069_v61, %v645_v59 }
 0x208   : > { %921 = vrot.lane.b32.xlu1 %v2133_v21, %s2044_s25  ;;  %v1135_v3 = vsel %vm1132_vm6, %v1102_v63, %v2416_v1 }
 0x209   : > { %779 = vrot.lane.b32.xlu0 %v2229_v31, %s2041_s22 }
 0x20a   : > { %v647_v30 = vpop.permute.xlu1 %646 }
 0x20b   : > { %v1103_v60 = vsel %vm1099_vm5, %v1070_v9, %v647_v30  ;;  %v2704_v30 = vpop.permute.xlu0 %923 }
 0x20c   : > { %664 = vrot.lane.b32.xlu1 %v2119_v17, %s2040_s21  ;;  %v1136_v50 = vsel %vm1132_vm6, %v1103_v60, %v2424_v48  ;;  %v1007_v60 = vsel %vm1004_vm2, %v2626_v44, %v2275_v40 }
 0x20d   : > { %497 = vrot.lane.b32.xlu0 %v2159_v26, %s2042_s23  ;;  %v1169_v11 = vsel %vm1165_vm7, %v1136_v50, %v2440_v45  ;;  %v1039_v57 = vsel %vm1034_vm3, %v1007_v60, %v2432_v53  ;;  %v1006_v50 = vsel %vm1004_vm2, %v2626_v44, %v2255_v36 }
 0x20e   : > { %v456_v41 = vpop.permute.xlu1 %455  ;;  %v1202_v14 = vsel %vm1198_vm8, %v1169_v11, %v2456_v42  ;;  %v1072_v61 = vsel %vm1066_vm4, %v1039_v57, %v2448_v58  ;;  %v979_v57 = vsel %vm976_vm1, 0.0, %v2263_v38 }
 0x20f   : > { %v2722_v45 = vpop.permute.xlu0 %757  ;;  %v1038_v11 = vsel %vm1034_vm3, %v1006_v50, %v456_v41  ;;  %v978_v50 = vsel %vm976_vm1, 0.0, %v2235_v32 }
 0x210   : > { %666 = vrot.lane.b32.xlu1 %v2121_v18, %s2040_s21  ;;  %v1008_v38 = vsel %vm1004_vm2, %v978_v50, %v2299_v46  ;;  %v3560_v50 = vld [vmem:[#allocation17_spill] sm:$0xff] }
 0x211   : > { %866 = vrot.lane.b32.xlu0 %v2249_v35, %s2043_s24 }
 0x212   : > { %v825_v55 = vpop.permute.xlu1 %824 }
 0x213   : > { %v1168_v16 = vsel %vm1165_vm7, %v1135_v3, %v825_v55  ;;  %v2730_v55 = vpop.permute.xlu0 %759 }
 0x214   : > { %475 = vrot.lane.b32.xlu1 %v2115_v15, %s2042_s23 }
 0x215   : > { %594 = vrot.lane.b32.xlu0 %v2211_v28, %s2039_s20 }
 0x216   : > { %v553_v62 = vpop.permute.xlu1 %552 }
 0x217   : > { %v2748_v3 = vpop.permute.xlu0 %477  ;;  %v1071_v53 = vsel %vm1066_vm4, %v1038_v11, %v553_v62 }
 0x218   : > { %844 = vrot.lane.b32.xlu1 %v2133_v21, %s2043_s24 }
 0x219   : > { %947 = vrot.lane.b32.xlu0 %v2269_v39, %s2044_s25 }
 0x21a   : > { %v906_v59 = vpop.permute.xlu1 %905 }
 0x21b   : > { %v1201_v48 = vsel %vm1198_vm8, %v1168_v16, %v906_v59  ;;  %v2762_v44 = vpop.permute.xlu0 %846 }
 0x21c   : > { %572 = vrot.lane.b32.xlu1 %v2119_v17, %s2039_s20  ;;  %1951 = vmatprep.mubr.msk.f32.mxu0 %vm1236_vm9, %v1201_v48 }
 0x21d   : > { %781 = vrot.lane.b32.xlu0 %v2237_v33, %s2041_s22  ;;  %1952 = vmatmul.mubr.msk.f32.gmra.mrb[2].mxu0 %vm1236_vm9, %v1202_v14 }
 0x21e   : > { %v649_v1 = vpop.permute.xlu1 %648 }
 0x21f   : > { %v1104_v58 = vsel %vm1099_vm5, %v1071_v53, %v649_v1 }
 0x220   : > { %925 = vrot.lane.b32.xlu1 %v2145_v23, %s2044_s25  ;;  %v1137_v41 = vsel %vm1132_vm6, %v1104_v58, %v2464_v43 }
 0x221   : > { %783 = vrot.lane.b32.xlu0 %v2249_v35, %s2041_s22 }
 0x222   : > { %v651_v9 = vpop.permute.xlu1 %650 }
 0x223   : > { %v1105_v40 = vsel %vm1099_vm5, %v1072_v61, %v651_v9  ;;  %v1009_v61 = vsel %vm1004_vm2, %v979_v57, %v2321_v51  ;;  %v3558_v57 = vld [vmem:[#allocation13_spill] sm:$0xff] }
 0x224   : > { %668 = vrot.lane.b32.xlu1 %v2123_v19, %s2040_s21  ;;  %v1138_v16 = vsel %vm1132_vm6, %v1105_v40, %v2472_v2 }
 0x225   : > { %501 = vrot.lane.b32.xlu0 %v2211_v28, %s2042_s23  ;;  %v1171_v62 = vsel %vm1165_vm7, %v1138_v16, %v2488_v8  ;;  %v2780_v8 = vpop.permute.xlu0 %574 }
 0x226   : > { %v460_v42 = vpop.permute.xlu1 %459  ;;  %v1204_v14 = vsel %vm1198_vm8, %v1171_v62, %v2504_v54  ;;  %v3556_v54 = vmov 0.0  }
 0x227   : > { %v1040_v58 = vsel %vm1034_vm3, %v1008_v38, %v460_v42  ;;  %v3562_v38 = vld [vmem:[#allocation51_spill] sm:$0xff] }
 0x228   : > { %670 = vrot.lane.b32.xlu1 %v2127_v20, %s2040_s21 }
 0x229   : > { %870 = vrot.lane.b32.xlu0 %v2269_v39, %s2043_s24  ;;  %v2788_v9 = vpop.permute.xlu0 %927 }
 0x22a   : > { %v829_v63 = vpop.permute.xlu1 %828 }
 0x22b   : > { %v1170_v59 = vsel %vm1165_vm7, %v1137_v41, %v829_v63  ;;  %v1041_v63 = vsel %vm1034_vm3, %v1009_v61, %v2480_v52  ;;  %v3559_v61 = vld [vmem:[#allocation47_spill] sm:$0xff] }
 0x22c   : > { %479 = vrot.lane.b32.xlu1 %v2119_v17, %s2042_s23  ;;  %v1074_v40 = vsel %vm1066_vm4, %v1041_v63, %v2496_v5 }
 0x22d   : > { %598 = vrot.lane.b32.xlu0 %v2229_v31, %s2039_s20  ;;  %v2808_v51 = vpop.permute.xlu0 %761 }
 0x22e   : > { %v557_v36 = vpop.permute.xlu1 %556 }
 0x22f   : > { %v1073_v52 = vsel %vm1066_vm4, %v1040_v58, %v557_v36 }
 0x230   : > { %848 = vrot.lane.b32.xlu1 %v2145_v23, %s2043_s24 }
 0x231   : > { %410 = vrot.lane.b32.xlu0 %v2201_v27, %s2038_s19  ;;  %v2822_v16 = vpop.permute.xlu0 %763 }
 0x232   : > { %v910_v48 = vpop.permute.xlu1 %909 }
 0x233   : > { %v1203_v2 = vsel %vm1198_vm8, %v1170_v59, %v910_v48 }
 0x234   : > { %576 = vrot.lane.b32.xlu1 %v2123_v19, %s2039_s20  ;;  %1954 = vmatprep.mubr.msk.f32.mxu0 %vm1236_vm9, %v1203_v2 }
 0x235   : > { %785 = vrot.lane.b32.xlu0 %v2257_v37, %s2041_s22  ;;  %1955 = vmatmul.mubr.msk.f32.gmra.mrb[4].mxu0 %vm1236_vm9, %v1204_v14  ;;  %v981_v14 = vsel %vm976_vm1, %v2085_v4, %v2313_v49 }
 0x236   : > { %v653_v43 = vpop.permute.xlu1 %652 }
 0x237   : > { %v1106_v5 = vsel %vm1099_vm5, %v1073_v52, %v653_v43  ;;  %v3557_v43 = vld [vmem:[#allocation28_spill] sm:$0xff]  ;;  %v3563_v52 = vld [vmem:[#allocation25_spill] sm:$0xff] }
 0x238   : > { %929 = vrot.lane.b32.xlu1 %v2155_v25, %s2044_s25  ;;  %v1139_v42 = vsel %vm1132_vm6, %v1106_v5, %v2512_v0 }
 0x239   : > { %503 = vrot.lane.b32.xlu0 %v2217_v29, %s2042_s23 }
 0x23a   : > { %v655_v1 = vpop.permute.xlu1 %654 }
 0x23b   : > { %v1107_v53 = vsel %vm1099_vm5, %v1074_v40, %v655_v1  ;;  %v1011_v1 = vsel %vm1004_vm2, %v981_v14, %v3557_v43  ;;  %v3561_v40 = vld [vmem:[#allocation2_spill] sm:$0xff]  ;;  %v3565_v14 = vld [vmem:[#allocation55_spill] sm:$0xff] }
 0x23c   : > { %672 = vrot.lane.b32.xlu1 %v2133_v21, %s2040_s21  ;;  %v1140_v32 = vsel %vm1132_vm6, %v1107_v53, %v2520_v6  ;;  %v1043_v63 = vsel %vm1034_vm3, %v1011_v1, %v3559_v61  ;;  %v3567_v61 = vld [vmem:[#allocation64_spill] sm:$0xff] }
 0x23d   : > { %872 = vrot.lane.b32.xlu0 %v3556_v54, %s2043_s24  ;;  %v1173_v36 = vsel %vm1165_vm7, %v1140_v32, %v2540_v10  ;;  %v2840_v10 = vpop.permute.xlu0 %481  ;;  %v1076_v53 = vsel %vm1066_vm4, %v1043_v63, %v3562_v38 }
 0x23e   : > { %v464_v60 = vpop.permute.xlu1 %463  ;;  %v1206_v59 = vsel %vm1198_vm8, %v1173_v36, %v2562_v12 }
 0x240   : > { %674 = vrot.lane.b32.xlu1 %v2139_v22, %s2040_s21 }
 0x241   : > { %600 = vrot.lane.b32.xlu0 %v2237_v33, %s2039_s20  ;;  %v2848_v2 = vpop.permute.xlu0 %850 }
 0x242   : > { %v833_v11 = vpop.permute.xlu1 %832 }
 0x243   : > { %v1172_v41 = vsel %vm1165_vm7, %v1139_v42, %v833_v11  ;;  %v980_v11 = vsel %vm976_vm1, %v3561_v40, %v3560_v50 }
 0x244   : > { %483 = vrot.lane.b32.xlu1 %v2123_v19, %s2042_s23  ;;  %v1010_v4 = vsel %vm1004_vm2, %v980_v11, %v3563_v52  ;;  %v3569_v52 = vld [vmem:[#allocation4_spill] sm:$0xff] }
 0x245   : > { %696 = vrot.lane.b32.xlu0 %v2257_v37, %s2040_s21  ;;  %v2868_v49 = vpop.permute.xlu0 %578  ;;  %v1042_v32 = vsel %vm1034_vm3, %v1010_v4, %v464_v60  ;;  %v3566_v60 = vld [vmem:[#allocation62_spill] sm:$0xff] }
 0x246   : > { %v561_v46 = vpop.permute.xlu1 %560 }
 0x247   : > { %v1075_v42 = vsel %vm1066_vm4, %v1042_v32, %v561_v46 }
 0x248   : > { %852 = vrot.lane.b32.xlu1 %v2155_v25, %s2043_s24 }
 0x249   : > { %698 = vrot.lane.b32.xlu0 %v2269_v39, %s2040_s21 }
 0x24a   : > { %v914_v62 = vpop.permute.xlu1 %913 }
 0x24b   : > { %v1205_v6 = vsel %vm1198_vm8, %v1172_v41, %v914_v62  ;;  %v3564_v41 = vld [vmem:[#allocation57_spill] sm:$0xff] }
 0x24c   : > { %580 = vrot.lane.b32.xlu1 %v2133_v21, %s2039_s20  ;;  %1957 = vmatprep.mubr.msk.f32.mxu0 %vm1236_vm9, %v1205_v6 }
 0x24d   : > { %416 = vrot.lane.b32.xlu0 %v2229_v31, %s2038_s19  ;;  %1958 = vmatmul.mubr.msk.f32.gmra.mrb[6].mxu0 %vm1236_vm9, %v1206_v59  ;;  %v2880_v59 = vpop.permute.xlu0 %931 }
 0x24e   : > { %v657_v0 = vpop.permute.xlu1 %656 }
 0x24f   : > { %v1108_v36 = vsel %vm1099_vm5, %v1075_v42, %v657_v0  ;;  %v3571_v42 = vld [vmem:[#allocation60_spill] sm:$0xff] }
 0x250   : > { %933 = vrot.lane.b32.xlu1 %v2201_v27, %s2044_s25 }
 0x251   : > { %509 = vrot.lane.b32.xlu0 %v2249_v35, %s2042_s23  ;;  %v2894_v40 = vpop.permute.xlu0 %765 }
 0x252   : > { %v659_v48 = vpop.permute.xlu1 %658 }
 0x253   : > { %v1109_v5 = vsel %vm1099_vm5, %v1076_v53, %v659_v48  ;;  %v1141_v48 = vsel %vm1132_vm6, %v1108_v36, %v3565_v14 }
 0x254   : > { %676 = vrot.lane.b32.xlu1 %v2145_v23, %s2040_s21  ;;  %v1142_v62 = vsel %vm1132_vm6, %v1109_v5, %v3564_v41  ;;  %v3570_v5 = vld [vmem:[#allocation34_spill] sm:$0xff]  ;;  %v3572_v41 = vld [vmem:[#allocation24_spill] sm:$0xff] }
 0x255   : > { %606 = vrot.lane.b32.xlu0 %v2269_v39, %s2039_s20  ;;  %v1175_v43 = vsel %vm1165_vm7, %v1142_v62, %v3566_v60  ;;  %v2900_v38 = vpop.permute.xlu0 %767  ;;  %v3573_v62 = vld [vmem:[#allocation3_spill] sm:$0xff] }
 0x256   : > { %v468_v12 = vpop.permute.xlu1 %467  ;;  %v1208_v63 = vsel %vm1198_vm8, %v1175_v43, %v3567_v61  ;;  %v982_v14 = vsel %vm976_vm1, %v3573_v62, %v3572_v41 }
 0x258   : > { %678 = vrot.lane.b32.xlu1 %v3558_v57, %s2040_s21 }
 0x25a   : > { %v837_v58 = vpop.permute.xlu1 %836 }
 0x25b   : > { %v1174_v1 = vsel %vm1165_vm7, %v1141_v48, %v837_v58  ;;  %v3568_v58 = vld [vmem:[#allocation27_spill] sm:$0xff] }
 0x25c   : > { %487 = vrot.lane.b32.xlu1 %v2133_v21, %s2042_s23  ;;  %v983_v4 = vsel %vm976_vm1, %v3569_v52, %v3568_v58  ;;  %v3574_v48 = vld [vmem:[#allocation63_spill] sm:$0xff] }
 0x25d   : > { %v1013_v32 = vsel %vm1004_vm2, %v983_v4, %v3570_v5 }
 0x25e   : > { %v565_v6 = vpop.permute.xlu1 %564  ;;  %v1045_v36 = vsel %vm1034_vm3, %v1013_v32, %v3571_v42 }
 0x25f   : > { %v1078_v60 = vsel %vm1066_vm4, %v1045_v36, %v3574_v48  ;;  %v3577_v48 = vld [vmem:[#allocation6_spill] sm:$0xff] }
 0x260   : > { %856 = vrot.lane.b32.xlu1 %v2201_v27, %s2043_s24 }
 0x262   : > { %v918_v46 = vpop.permute.xlu1 %917 }
 0x263   : > { %v1207_v0 = vsel %vm1198_vm8, %v1174_v1, %v918_v46  ;;  %v3575_v1 = vld [vmem:[#allocation31_spill] sm:$0xff] }
 0x264   : > { %584 = vrot.lane.b32.xlu1 %v2145_v23, %s2039_s20  ;;  %1960 = vmatprep.mubr.msk.f32.mxu0 %vm1236_vm9, %v1207_v0  ;;  %v1012_v46 = vsel %vm1004_vm2, %v982_v14, %v3575_v1  ;;  %v2918_v0 = vpop.permute.xlu0 %485  ;;  %v3576_v14 = vld [vmem:[#allocation33_spill] sm:$0xff] }
 0x265   : > { %1961 = vmatmul.mubr.msk.f32.gmra.mrb[8].mxu0 %vm1236_vm9, %v1208_v63  ;;  %v1044_v63 = vsel %vm1034_vm3, %v1012_v46, %v468_v12  ;;  %v3579_v46 = vld [vmem:[#allocation30_spill] sm:$0xff] }
 0x266   : > { %v661_v50 = vpop.permute.xlu1 %660  ;;  %v1077_v58 = vsel %vm1066_vm4, %v1044_v63, %v565_v6 }
 0x267   : > { %v1110_v52 = vsel %vm1099_vm5, %v1077_v58, %v661_v50 }
 0x268   : > { %937 = vrot.lane.b32.xlu1 %v2217_v29, %s2044_s25  ;;  %v2930_v32 = vpop.permute.xlu0 %854 }
 0x26a   : > { %v663_v11 = vpop.permute.xlu1 %662 }
 0x26b   : > { %v1111_v61 = vsel %vm1099_vm5, %v1078_v60, %v663_v11  ;;  %v1143_v11 = vsel %vm1132_vm6, %v1110_v52, %v2637_v24  ;;  %v985_v60 = vsel %vm976_vm1, %v3577_v48, %v3576_v14 }
 0x26c   : > { %680 = vrot.lane.b32.xlu1 %v2155_v25, %s2040_s21  ;;  %v1144_v4 = vsel %vm1132_vm6, %v1111_v61, %v2654_v7  ;;  %v2944_v24 = vpop.permute.xlu0 %582  ;;  %v3580_v61 = vld [vmem:[#allocation5_spill] sm:$0xff] }
 0x26d   : > { %v1177_v12 = vsel %vm1165_vm7, %v1144_v4, %v2678_v34  ;;  %v984_v63 = vsel %vm976_vm1, %v3580_v61, %v3579_v46  ;;  %v3581_v4 = vld [vmem:[#allocation46_spill] sm:$0xff]  ;;  %v3583_v46 = vld [vmem:[#allocation8_spill] sm:$0xff] }
 0x26e   : > { %v472_v53 = vpop.permute.xlu1 %471  ;;  %v1210_v7 = vsel %vm1198_vm8, %v1177_v12, %v2704_v30  ;;  %v3578_v30 = vld [vmem:[#allocation48_spill] sm:$0xff] }
 0x270   : > { %682 = vrot.lane.b32.xlu1 %v2159_v26, %s2040_s21  ;;  %v2950_v41 = vpop.permute.xlu0 %935 }
 0x272   : > { %v841_v43 = vpop.permute.xlu1 %840 }
 0x273   : > { %v1176_v42 = vsel %vm1165_vm7, %v1143_v11, %v841_v43  ;;  %v1015_v43 = vsel %vm1004_vm2, %v985_v60, %v3578_v30  ;;  %v1014_v11 = vsel %vm1004_vm2, %v984_v63, %v3581_v4  ;;  %v3586_v4 = vld [vmem:[#allocation7_spill] sm:$0xff] }
 0x274   : > { %491 = vrot.lane.b32.xlu1 %v2145_v23, %s2042_s23  ;;  %v1047_v1 = vsel %vm1034_vm3, %v1015_v43, %v2670_v47  ;;  %v2968_v12 = vpop.permute.xlu0 %769 }
 0x275   : > { %v1080_v58 = vsel %vm1066_vm4, %v1047_v1, %v2690_v56  ;;  %v3582_v1 = vld [vmem:[#allocation38_spill] sm:$0xff] }
 0x276   : > { %v569_v5 = vpop.permute.xlu1 %568  ;;  %v987_v61 = vsel %vm976_vm1, %v3583_v46, %v3582_v1 }
 0x278   : > { %860 = vrot.lane.b32.xlu1 %v2217_v29, %s2043_s24  ;;  %v2980_v14 = vpop.permute.xlu0 %771 }
 0x27a   : > { %v922_v6 = vpop.permute.xlu1 %921 }
 0x27b   : > { %v1209_v50 = vsel %vm1198_vm8, %v1176_v42, %v922_v6  ;;  %v1046_v6 = vsel %vm1034_vm3, %v1014_v11, %v472_v53 }
 0x27c   : > { %588 = vrot.lane.b32.xlu1 %v2155_v25, %s2039_s20  ;;  %1963 = vmatprep.mubr.msk.f32.mxu0 %vm1236_vm9, %v1209_v50  ;;  %v1079_v47 = vsel %vm1066_vm4, %v1046_v6, %v569_v5 }
 0x27d   : > { %1964 = vmatmul.mubr.msk.f32.gmra.mrb[10].mxu0 %vm1236_vm9, %v1210_v7 }
 0x27e   : > { %v665_v36 = vpop.permute.xlu1 %664 }
 0x27f   : > { %v1112_v50 = vsel %vm1099_vm5, %v1079_v47, %v665_v36  ;;  %v3587_v47 = vld [vmem:[#allocation49_spill] sm:$0xff] }
 0x280   : > { %941 = vrot.lane.b32.xlu1 %v2237_v33, %s2044_s25 }
 0x282   : > { %v667_v34 = vpop.permute.xlu1 %666 }
 0x283   : > { %v1113_v42 = vsel %vm1099_vm5, %v1080_v58, %v667_v34  ;;  %v1145_v34 = vsel %vm1132_vm6, %v1112_v50, %v2722_v45  ;;  %v2994_v45 = vpop.permute.xlu0 %489 }
 0x284   : > { %684 = vrot.lane.b32.xlu1 %v2201_v27, %s2040_s21  ;;  %v1146_v56 = vsel %vm1132_vm6, %v1113_v42, %v2730_v55 }
 0x285   : > { %v1179_v53 = vsel %vm1165_vm7, %v1146_v56, %v2762_v44 }
 0x286   : > { %v476_v62 = vpop.permute.xlu1 %475  ;;  %v1212_v55 = vsel %vm1198_vm8, %v1179_v53, %v2788_v9  ;;  %v3584_v9 = vld [vmem:[#allocation50_spill] sm:$0xff] }
 0x287   : > { %v3000_v30 = vpop.permute.xlu0 %858  ;;  %v1017_v63 = vsel %vm1004_vm2, %v987_v61, %v3584_v9  ;;  %v3588_v61 = vld [vmem:[#allocation41_spill] sm:$0xff]  ;;  %v3589_v9 = vld [vmem:[#allocation10_spill] sm:$0xff] }
 0x288   : > { %686 = vrot.lane.b32.xlu1 %v2211_v28, %s2040_s21  ;;  %v1049_v58 = vsel %vm1034_vm3, %v1017_v63, %v2748_v3  ;;  %v989_v63 = vsel %vm976_vm1, %v3589_v9, %v3588_v61  ;;  %v3597_v9 = vld [vmem:[#allocation42_spill] sm:$0xff] }
 0x289   : > { %v1082_v42 = vsel %vm1066_vm4, %v1049_v58, %v2780_v8 }
 0x28a   : > { %v845_v52 = vpop.permute.xlu1 %844 }
 0x28b   : > { %v1178_v48 = vsel %vm1165_vm7, %v1145_v34, %v845_v52  ;;  %v3585_v52 = vld [vmem:[#allocation36_spill] sm:$0xff]  ;;  %v3018_v56 = vpop.permute.xlu0 %586 }
 0x28c   : > { %495 = vrot.lane.b32.xlu1 %v2155_v25, %s2042_s23  ;;  %v986_v11 = vsel %vm976_vm1, %v3586_v4, %v3585_v52  ;;  %v3591_v4 = vld [vmem:[#allocation40_spill] sm:$0xff] }
 0x28d   : > { %v1016_v50 = vsel %vm1004_vm2, %v986_v11, %v3587_v47  ;;  %v3592_v11 = vld [vmem:[#allocation9_spill] sm:$0xff] }
 0x28e   : > { %v573_v7 = vpop.permute.xlu1 %572  ;;  %v1048_v53 = vsel %vm1034_vm3, %v1016_v50, %v476_v62  ;;  %v3593_v50 = vld [vmem:[#allocation52_spill] sm:$0xff] }
 0x28f   : > { %v1081_v3 = vsel %vm1066_vm4, %v1048_v53, %v573_v7 }
 0x290   : > { %864 = vrot.lane.b32.xlu1 %v2237_v33, %s2043_s24 }
 0x292   : > { %v926_v5 = vpop.permute.xlu1 %925 }
 0x293   : > { %v1211_v36 = vsel %vm1198_vm8, %v1178_v48, %v926_v5 }
 0x294   : > { %592 = vrot.lane.b32.xlu1 %v2201_v27, %s2039_s20  ;;  %1966 = vmatprep.mubr.msk.f32.mxu0 %vm1236_vm9, %v1211_v36  ;;  %v3030_v36 = vpop.permute.xlu0 %939 }
 0x295   : > { %1967 = vmatmul.mubr.msk.f32.gmra.mrb[12].mxu0 %vm1236_vm9, %v1212_v55 }
 0x296   : > { %v669_v60 = vpop.permute.xlu1 %668 }
 0x297   : > { %v1114_v48 = vsel %vm1099_vm5, %v1081_v3, %v669_v60 }
 0x298   : > { %945 = vrot.lane.b32.xlu1 %v2257_v37, %s2044_s25  ;;  %v1147_v55 = vsel %vm1132_vm6, %v1114_v48, %v2808_v51  ;;  %v3044_v51 = vpop.permute.xlu0 %773 }
 0x29a   : > { %v671_v44 = vpop.permute.xlu1 %670 }
 0x29b   : > { %v1115_v34 = vsel %vm1099_vm5, %v1082_v42, %v671_v44  ;;  %v988_v42 = vsel %vm976_vm1, %v3592_v11, %v3591_v4 }
 0x29c   : > { %688 = vrot.lane.b32.xlu1 %v2217_v29, %s2040_s21  ;;  %v1148_v8 = vsel %vm1132_vm6, %v1115_v34, %v2822_v16  ;;  %v3050_v1 = vpop.permute.xlu0 %775  ;;  %v1018_v34 = vsel %vm1004_vm2, %v988_v42, %v3593_v50 }
 0x29d   : > { %v1181_v62 = vsel %vm1165_vm7, %v1148_v8, %v2848_v2 }
 0x29e   : > { %v480_v43 = vpop.permute.xlu1 %479  ;;  %v1214_v16 = vsel %vm1198_vm8, %v1181_v62, %v2880_v59  ;;  %v3590_v59 = vld [vmem:[#allocation53_spill] sm:$0xff] }
 0x29f   : > { %v1019_v58 = vsel %vm1004_vm2, %v989_v63, %v3590_v59  ;;  %v1050_v48 = vsel %vm1034_vm3, %v1018_v34, %v480_v43 }
 0x2a0   : > { %690 = vrot.lane.b32.xlu1 %v2229_v31, %s2040_s21  ;;  %v1051_v52 = vsel %vm1034_vm3, %v1019_v58, %v2840_v10  ;;  %v3068_v53 = vpop.permute.xlu0 %493  ;;  %v3598_v58 = vld [vmem:[#allocation54_spill] sm:$0xff] }
 0x2a2   : > { %v849_v6 = vpop.permute.xlu1 %848 }
 0x2a4   : > { %499 = vrot.lane.b32.xlu1 %v2201_v27, %s2042_s23  ;;  %v1180_v27 = vsel %vm1165_vm7, %v1147_v55, %v849_v6  ;;  %v1084_v6 = vsel %vm1066_vm4, %v1051_v52, %v2868_v49  ;;  %v3080_v62 = vpop.permute.xlu0 %862 }
 0x2a6   : > { %v577_v5 = vpop.permute.xlu1 %576 }
 0x2a7   : > { %v1083_v10 = vsel %vm1066_vm4, %v1050_v48, %v577_v5 }
 0x2a8   : > { %868 = vrot.lane.b32.xlu1 %v2257_v37, %s2043_s24 }
 0x2aa   : > { %v930_v7 = vpop.permute.xlu1 %929 }
 0x2ab   : > { %v1213_v60 = vsel %vm1198_vm8, %v1180_v27, %v930_v7 }
 0x2ac   : > { %596 = vrot.lane.b32.xlu1 %v2217_v29, %s2039_s20  ;;  %1969 = vmatprep.mubr.msk.f32.mxu0 %vm1236_vm9, %v1213_v60  ;;  %v3594_v60 = vld [vmem:[#allocation43_spill] sm:$0xff] }
 0x2ad   : > { %1970 = vmatmul.mubr.msk.f32.gmra.mrb[14].mxu0 %vm1236_vm9, %v1214_v16 }
 0x2ae   : > { %v673_v44 = vpop.permute.xlu1 %672 }
 0x2af   : > { %v1116_v8 = vsel %vm1099_vm5, %v1083_v10, %v673_v44 }
 0x2b0   : > { %949 = vrot.lane.b32.xlu1 %v3556_v54, %s2044_s25  ;;  %v1149_v27 = vsel %vm1132_vm6, %v1116_v8, %v2894_v40 }
 0x2b2   : > { %v675_v2 = vpop.permute.xlu1 %674 }
 0x2b3   : > { %v1117_v3 = vsel %vm1099_vm5, %v1084_v6, %v675_v2  ;;  %v3596_v2 = vld [vmem:[#allocation16_spill] sm:$0xff] }
 0x2b4   : > { %692 = vrot.lane.b32.xlu1 %v2237_v33, %s2040_s21  ;;  %v1150_v49 = vsel %vm1132_vm6, %v1117_v3, %v2900_v38  ;;  %v3094_v38 = vpop.permute.xlu0 %590 }
 0x2b5   : > { %v1183_v43 = vsel %vm1165_vm7, %v1150_v49, %v2930_v32 }
 0x2b6   : > { %v484_v46 = vpop.permute.xlu1 %483 }
 0x2b8   : > { %694 = vrot.lane.b32.xlu1 %v2249_v35, %s2040_s21  ;;  %v3103_v44 = vpop.permute.xlu0 %943 }
 0x2ba   : > { %v853_v47 = vpop.permute.xlu1 %852 }
 0x2bc   : > { %412 = vrot.lane.b32.xlu1 %v2211_v28, %s2038_s19  ;;  %v1182_v28 = vsel %vm1165_vm7, %v1149_v27, %v853_v47  ;;  %v3119_v4 = vpop.permute.xlu0 %777 }
 0x2be   : > { %v581_v55 = vpop.permute.xlu1 %580 }
 0x2c0   : > { %787 = vrot.lane.b32.xlu1 %v2269_v39, %s2041_s22  ;;  %v1216_v39 = vsel %vm1198_vm8, %v1183_v43, %v2950_v41 }
 0x2c2   : > { %v934_v5 = vpop.permute.xlu1 %933 }
 0x2c3   : > { %v1215_v7 = vsel %vm1198_vm8, %v1182_v28, %v934_v5 }
 0x2c4   : > { %505 = vrot.lane.b32.xlu1 %v2229_v31, %s2042_s23  ;;  %1972 = vmatprep.mubr.msk.f32.mxu1 %vm1236_vm9, %v1215_v7  ;;  %v3595_v31 = vld [vmem:[#allocation11_spill] sm:$0xff] }
 0x2c5   : > { %1973 = vmatmul.mubr.msk.f32.vlgmr.msra.gmra.mrb[0].mxu1 %vm1236_vm9, %v1216_v39  ;;  %v991_v16 = vsel %vm976_vm1, %v3595_v31, %v3594_v60  ;;  %v3599_v39 = vld [vmem:[#allocation45_spill] sm:$0xff] }
 0x2c6   : > { %v677_v40 = vpop.permute.xlu1 %676  ;;  %v1021_v61 = vsel %vm1004_vm2, %v991_v16, %v3596_v2  ;;  %v3602_v2 = vld [vmem:[#allocation44_spill] sm:$0xff] }
 0x2c8   : > { %602 = vrot.lane.b32.xlu1 %v2249_v35, %s2039_s20  ;;  %v1053_v35 = vsel %vm1034_vm3, %v1021_v61, %v2918_v0  ;;  %v992_v61 = vsel %vm976_vm1, %v2115_v15, %v3602_v2 }
 0x2c9   : > { %v1086_v63 = vsel %vm1066_vm4, %v1053_v35, %v2944_v24 }
 0x2ca   : > { %v679_v32 = vpop.permute.xlu1 %678 }
 0x2cb   : > { %v1119_v11 = vsel %vm1099_vm5, %v1086_v63, %v679_v32 }
 0x2cc   : > { %414 = vrot.lane.b32.xlu1 %v2217_v29, %s2038_s19  ;;  %v990_v29 = vsel %vm976_vm1, %v2111_v13, %v3597_v9  ;;  %v1152_v24 = vsel %vm1132_vm6, %v1119_v11, %v2980_v14 }
 0x2cd   : > { %v1020_v52 = vsel %vm1004_vm2, %v990_v29, %v3598_v58  ;;  %v1185_v48 = vsel %vm1165_vm7, %v1152_v24, %v3000_v30  ;;  %v3603_v29 = vld [vmem:[#allocation56_spill] sm:$0xff] }
 0x2ce   : > { %v488_v41 = vpop.permute.xlu1 %487  ;;  %v1052_v42 = vsel %vm1034_vm3, %v1020_v52, %v484_v46  ;;  %v1218_v30 = vsel %vm1198_vm8, %v1185_v48, %v3030_v36  ;;  %v1022_v63 = vsel %vm1004_vm2, %v992_v61, %v3603_v29 }
 0x2cf   : > { %v1085_v0 = vsel %vm1066_vm4, %v1052_v42, %v581_v55  ;;  %v1054_v52 = vsel %vm1034_vm3, %v1022_v63, %v488_v41 }
 0x2d0   : > { %789 = vrot.lane.b32.xlu1 %v3556_v54, %s2041_s22  ;;  %v1118_v13 = vsel %vm1099_vm5, %v1085_v0, %v677_v40  ;;  %v3600_v40 = vld [vmem:[#allocation12_spill] sm:$0xff] }
 0x2d1   : > { %v1151_v47 = vsel %vm1132_vm6, %v1118_v13, %v2968_v12  ;;  %v993_v32 = vsel %vm976_vm1, %v3600_v40, %v3599_v39  ;;  %v3605_v39 = vld [vmem:[#allocation20_spill] sm:$0xff]  ;;  %v3606_v40 = vld [vmem:[#allocation14_spill] sm:$0xff] }
 0x2d2   : > { %v857_v59 = vpop.permute.xlu1 %856 }
 0x2d3   : > { %v1184_v14 = vsel %vm1165_vm7, %v1151_v47, %v857_v59 }
 0x2d4   : > { %507 = vrot.lane.b32.xlu1 %v2237_v33, %s2042_s23  ;;  %v3136_v33 = vpop.permute.xlu0 %779 }
 0x2d6   : > { %v585_v6 = vpop.permute.xlu1 %584 }
 0x2d8   : > { %604 = vrot.lane.b32.xlu1 %v2257_v37, %s2039_s20  ;;  %v1950_v46 = vpop.f32.mrb[0].mxu0  ;;  %v3158_v5 = vpop.permute.xlu0 %497 }
 0x2d9   : > { %v1563_v50 = vsel %vm1004_vm2, %v1950_v46, 0.0  ;;  %v1632_v34 = vmul.f32 %v1950_v46, %v1950_v46  ;;  %1737 = vst.msk [vmem:[%s3129_s14 + $0x8] sm:$0xff] %vm1004_vm2, %v1950_v46  ;;  %v1403_v3 = vpop.f32.mrb[1].mxu0 }
 0x2da   : > { %v1562_v10 = vsel %vm1004_vm2, %v1403_v3, 0.0  ;;  %v1631_v37 = vmul.f32 %v1403_v3, %v1403_v3  ;;  %1736 = vst.msk [vmem:[%s3129_s14] sm:$0xff] %vm1004_vm2, %v1403_v3  ;;  %v938_v8 = vpop.permute.xlu1 %937 }
 0x2db   : > { %v1664_v49 = vsel %vm1004_vm2, %v1632_v34, 0.0  ;;  %v1564_v12 = vadd.f32 %v1563_v50, %v1562_v10  ;;  %v1217_v55 = vsel %vm1198_vm8, %v1184_v14, %v938_v8 }
 0x2dc   : > { %v1663_v27 = vsel %vm1004_vm2, %v1631_v37, 0.0  ;;  %700 = vrot.lane.b32.xlu1 %v3556_v54, %s2040_s21  ;;  %1975 = vmatprep.mubr.msk.f32.mxu1 %vm1236_vm9, %v1217_v55  ;;  %v3163_v60 = vpop.permute.xlu0 %866  ;;  %v3601_v54 = vld [vmem:[#allocation18_spill] sm:$0xff] }
 0x2dd   : > { %v1665_v43 = vadd.f32 %v1664_v49, %v1663_v27  ;;  %1976 = vmatmul.mubr.msk.f32.gmra.mrb[2].mxu1 %vm1236_vm9, %v1218_v30  ;;  %v1023_v16 = vsel %vm1004_vm2, %v993_v32, %v3601_v54  ;;  %v994_v32 = vsel %vm976_vm1, %v2119_v17, %v3606_v40 }
 0x2de   : > { %v681_v28 = vpop.permute.xlu1 %680  ;;  %v1055_v36 = vsel %vm1034_vm3, %v1023_v16, %v2994_v45  ;;  %v1087_v45 = vsel %vm1066_vm4, %v1054_v52, %v585_v6 }
 0x2df   : > { %v1088_v35 = vsel %vm1066_vm4, %v1055_v36, %v3018_v56  ;;  %v1120_v11 = vsel %vm1099_vm5, %v1087_v45, %v681_v28  ;;  %v3604_v28 = vld [vmem:[#allocation15_spill] sm:$0xff]  ;;  %v3607_v36 = vld [vmem:[#allocation58_spill] sm:$0xff] }
 0x2e0   : > { %v3176_v59 = vpop.permute.xlu0 %594  ;;  %v1153_v13 = vsel %vm1132_vm6, %v1120_v11, %v3044_v51  ;;  %v1024_v2 = vsel %vm1004_vm2, %v994_v32, %v3607_v36 }
 0x2e2   : > { %v683_v7 = vpop.permute.xlu1 %682 }
 0x2e3   : > { %v1121_v58 = vsel %vm1099_vm5, %v1088_v35, %v683_v7  ;;  %v995_v7 = vsel %vm976_vm1, %v2121_v18, %v3604_v28  ;;  %v3611_v28 = vld [vmem:[#allocation59_spill] sm:$0xff] }
 0x2e4   : > { %v1154_v15 = vsel %vm1132_vm6, %v1121_v58, %v3050_v1  ;;  %v948_v0 = vpop.permute.xlu0 %947 }
 0x2e5   : > { %v1187_v46 = vsel %vm1165_vm7, %v1154_v15, %v3080_v62 }
 0x2e6   : > { %v492_v31 = vpop.permute.xlu1 %491  ;;  %v1220_v62 = vsel %vm1198_vm8, %v1187_v46, %v3103_v44  ;;  %v1025_v44 = vsel %vm1004_vm2, %v995_v7, %v3605_v39 }
 0x2e7   : > { %v1056_v35 = vsel %vm1034_vm3, %v1024_v2, %v492_v31 }
 0x2e8   : > { %v3202_v49 = vpop.permute.xlu0 %781 }
 0x2ea   : > { %v861_v9 = vpop.permute.xlu1 %860 }
 0x2eb   : > { %v1186_v41 = vsel %vm1165_vm7, %v1153_v13, %v861_v9 }
 0x2ec   : > { %v784_v27 = vpop.permute.xlu0 %783 }
 0x2ee   : > { %v589_v42 = vpop.permute.xlu1 %588 }
 0x2f0   : > { %v1953_v56 = vpop.f32.mrb[2].mxu0  ;;  %v3218_v61 = vpop.permute.xlu0 %501 }
 0x2f1   : > { %1739 = vst.msk [vmem:[%s3129_s14 + $0x18] sm:$0xff] %vm1004_vm2, %v1953_v56  ;;  %v1413_v24 = vpop.f32.mrb[3].mxu0  ;;  %v1634_v6 = vmul.f32 %v1953_v56, %v1953_v56  ;;  %v1567_v51 = vsel %vm1004_vm2, %v1953_v56, 0.0 }
 0x2f2   : > { %v1565_v47 = vsel %vm1004_vm2, %v1413_v24, 0.0  ;;  %v1633_v50 = vmul.f32 %v1413_v24, %v1413_v24  ;;  %1738 = vst.msk [vmem:[%s3129_s14 + $0x10] sm:$0xff] %vm1004_vm2, %v1413_v24  ;;  %v942_v1 = vpop.permute.xlu1 %941 }
 0x2f3   : > { %v1566_v34 = vadd.f32 %v1565_v47, %v1564_v12  ;;  %v1219_v3 = vsel %vm1198_vm8, %v1186_v41, %v942_v1  ;;  %v1668_v37 = vsel %vm1004_vm2, %v1634_v6, 0.0 }
 0x2f4   : > { %v1666_v48 = vsel %vm1004_vm2, %v1633_v50, 0.0  ;;  %1978 = vmatprep.mubr.msk.f32.mxu1 %vm1236_vm9, %v1219_v3  ;;  %v871_v63 = vpop.permute.xlu0 %870  ;;  %v3608_v3 = vld [vmem:[#allocation22_spill] sm:$0xff] }
 0x2f5   : > { %v1667_v14 = vadd.f32 %v1666_v48, %v1665_v43  ;;  %1979 = vmatmul.mubr.msk.f32.gmra.mrb[4].mxu1 %vm1236_vm9, %v1220_v62  ;;  %v1568_v10 = vadd.f32 %v1567_v51, %v1566_v34  ;;  %v1057_v43 = vsel %vm1034_vm3, %v1025_v44, %v3068_v53  ;;  %v1089_v53 = vsel %vm1066_vm4, %v1056_v35, %v589_v42 }
 0x2f6   : > { %v685_v8 = vpop.permute.xlu1 %684  ;;  %v1090_v54 = vsel %vm1066_vm4, %v1057_v43, %v3094_v38  ;;  %v997_v51 = vsel %vm976_vm1, %v2127_v20, %v3608_v3 }
 0x2f7   : > { %v1669_v12 = vadd.f32 %v1668_v37, %v1667_v14  ;;  %v1122_v9 = vsel %vm1099_vm5, %v1089_v53, %v685_v8  ;;  %v3609_v14 = vld [vmem:[#allocation21_spill] sm:$0xff]  ;;  %v3610_v37 = vld [vmem:[#allocation19_spill] sm:$0xff]  ;;  %v3612_v53 = vld [vmem:[#allocation26_spill] sm:$0xff] }
 0x2f8   : > { %v1155_v58 = vsel %vm1132_vm6, %v1122_v9, %v3119_v4  ;;  %v599_v50 = vpop.permute.xlu0 %598  ;;  %v996_v8 = vsel %vm976_vm1, %v2123_v19, %v3610_v37  ;;  %v998_v9 = vsel %vm976_vm1, %v2133_v21, %v3612_v53 }
 0x2f9   : > { %v1026_v20 = vsel %vm1004_vm2, %v996_v8, %v3611_v28 }
 0x2fa   : > { %v687_v55 = vpop.permute.xlu1 %686 }
 0x2fb   : > { %v1123_v18 = vsel %vm1099_vm5, %v1090_v54, %v687_v55 }
 0x2fc   : > { %v1156_v17 = vsel %vm1132_vm6, %v1123_v18, %v3136_v33  ;;  %v3246_v48 = vpop.permute.xlu0 %410 }
 0x2fd   : > { %v1189_v45 = vsel %vm1165_vm7, %v1156_v17, %v3163_v60 }
 0x2fe   : > { %v496_v30 = vpop.permute.xlu1 %495  ;;  %v1222_v60 = vsel %vm1198_vm8, %v1189_v45, %v948_v0  ;;  %v1027_v0 = vsel %vm1004_vm2, %v997_v51, %v3609_v14 }
 0x2ff   : > { %v1058_v44 = vsel %vm1034_vm3, %v1026_v20, %v496_v30 }
 0x300   : > { %v786_v7 = vpop.permute.xlu0 %785 }
 0x302   : > { %v865_v16 = vpop.permute.xlu1 %864 }
 0x303   : > { %v1188_v31 = vsel %vm1165_vm7, %v1155_v58, %v865_v16 }
 0x304   : > { %v3264_v54 = vpop.permute.xlu0 %503 }
 0x306   : > { %v593_v29 = vpop.permute.xlu1 %592 }
 0x307   : > { %v1091_v43 = vsel %vm1066_vm4, %v1058_v44, %v593_v29 }
 0x308   : > { %v1956_v38 = vpop.f32.mrb[4].mxu0 }
 0x309   : > { %1741 = vst.msk [vmem:[%s3129_s14 + $0x28] sm:$0xff] %vm1004_vm2, %v1956_v38  ;;  %v1423_v52 = vpop.f32.mrb[5].mxu0  ;;  %v1636_v11 = vmul.f32 %v1956_v38, %v1956_v38  ;;  %v1571_v4 = vsel %vm1004_vm2, %v1956_v38, 0.0  ;;  %v3613_v38 = vld [vmem:[#allocation61_spill] sm:$0xff] }
 0x30a   : > { %v1569_v15 = vsel %vm1004_vm2, %v1423_v52, 0.0  ;;  %v1635_v42 = vmul.f32 %v1423_v52, %v1423_v52  ;;  %1740 = vst.msk [vmem:[%s3129_s14 + $0x20] sm:$0xff] %vm1004_vm2, %v1423_v52  ;;  %v946_v33 = vpop.permute.xlu1 %945 }
 0x30b   : > { %v1570_v56 = vadd.f32 %v1569_v15, %v1568_v10  ;;  %v1221_v13 = vsel %vm1198_vm8, %v1188_v31, %v946_v33  ;;  %v1672_v6 = vsel %vm1004_vm2, %v1636_v11, 0.0  ;;  %v1059_v10 = vsel %vm1034_vm3, %v1027_v0, %v3158_v5  ;;  %v3293_v33 = vpop.permute.xlu0 %872 }
 0x30c   : > { %v1670_v24 = vsel %vm1004_vm2, %v1635_v42, 0.0  ;;  %1981 = vmatprep.mubr.msk.f32.mxu1 %vm1236_vm9, %v1221_v13 }
 0x30d   : > { %v1671_v46 = vadd.f32 %v1670_v24, %v1669_v12  ;;  %1982 = vmatmul.mubr.msk.f32.gmra.mrb[6].mxu1 %vm1236_vm9, %v1222_v60  ;;  %v1572_v41 = vadd.f32 %v1571_v4, %v1570_v56  ;;  %v1092_v12 = vsel %vm1066_vm4, %v1059_v10, %v3176_v59 }
 0x30e   : > { %v689_v47 = vpop.permute.xlu1 %688 }
 0x30f   : > { %v1673_v1 = vadd.f32 %v1672_v6, %v1671_v46  ;;  %v1124_v5 = vsel %vm1099_vm5, %v1091_v43, %v689_v47  ;;  %v601_v47 = vpop.permute.xlu0 %600  ;;  %v3616_v43 = vld [vmem:[#allocation35_spill] sm:$0xff] }
 0x310   : > { %v1157_v59 = vsel %vm1132_vm6, %v1124_v5, %v3202_v49  ;;  %v1001_v5 = vsel %vm976_vm1, %v3558_v57, %v3616_v43 }
 0x312   : > { %v691_v34 = vpop.permute.xlu1 %690 }
 0x313   : > { %v1125_v39 = vsel %vm1099_vm5, %v1092_v12, %v691_v34  ;;  %v3615_v34 = vld [vmem:[#allocation23_spill] sm:$0xff]  ;;  %v697_v10 = vpop.permute.xlu0 %696 }
 0x314   : > { %v1158_v40 = vsel %vm1132_vm6, %v1125_v39, %v784_v27 }
 0x315   : > { %v1191_v36 = vsel %vm1165_vm7, %v1158_v40, %v871_v63  ;;  %v1028_v63 = vsel %vm1004_vm2, %v998_v9, %v3613_v38 }
 0x316   : > { %v500_v62 = vpop.permute.xlu1 %499 }
 0x317   : > { %v1060_v45 = vsel %vm1034_vm3, %v1028_v63, %v500_v62 }
 0x31a   : > { %v869_v55 = vpop.permute.xlu1 %868 }
 0x31b   : > { %v1190_v30 = vsel %vm1165_vm7, %v1157_v59, %v869_v55 }
 0x31e   : > { %v597_v19 = vpop.permute.xlu1 %596 }
 0x31f   : > { %v1093_v11 = vsel %vm1066_vm4, %v1060_v45, %v597_v19 }
 0x320   : > { %v1959_v32 = vpop.f32.mrb[6].mxu0 }
 0x321   : > { %1743 = vst.msk [vmem:[%s3129_s14 + $0x38] sm:$0xff] %vm1004_vm2, %v1959_v32  ;;  %v1433_v16 = vpop.f32.mrb[7].mxu0  ;;  %v1638_v2 = vmul.f32 %v1959_v32, %v1959_v32  ;;  %v1575_v58 = vsel %vm1004_vm2, %v1959_v32, 0.0 }
 0x322   : > { %v1573_v18 = vsel %vm1004_vm2, %v1433_v16, 0.0  ;;  %v1637_v35 = vmul.f32 %v1433_v16, %v1433_v16  ;;  %1742 = vst.msk [vmem:[%s3129_s14 + $0x30] sm:$0xff] %vm1004_vm2, %v1433_v16  ;;  %v3275_v27 = vpop.permute.xlu1 %949 }
 0x323   : > { %v1574_v49 = vadd.f32 %v1573_v18, %v1572_v41  ;;  %v1223_v17 = vsel %vm1198_vm8, %v1190_v30, %v3275_v27  ;;  %v1224_v29 = vsel %vm1198_vm8, %v1191_v36, %v3275_v27  ;;  %v1676_v15 = vsel %vm1004_vm2, %v1638_v2, 0.0  ;;  %v3614_v41 = vld [vmem:[#allocation29_spill] sm:$0xff]  ;;  %v3617_v36 = vld [vmem:[#allocation32_spill] sm:$0xff] }
 0x324   : > { %v1674_v52 = vsel %vm1004_vm2, %v1637_v35, 0.0  ;;  %1984 = vmatprep.mubr.msk.f32.mxu1 %vm1236_vm9, %v1223_v17  ;;  %v999_v6 = vsel %vm976_vm1, %v2139_v22, %v3614_v41  ;;  %v1000_v30 = vsel %vm976_vm1, %v2145_v23, %v3617_v36 }
 0x325   : > { %v1675_v31 = vadd.f32 %v1674_v52, %v1673_v1  ;;  %1985 = vmatmul.mubr.msk.f32.gmra.mrb[8].mxu1 %vm1236_vm9, %v1224_v29  ;;  %v1576_v21 = vadd.f32 %v1575_v58, %v1574_v49  ;;  %v1029_v3 = vsel %vm1004_vm2, %v999_v6, %v3615_v34  ;;  %v1030_v57 = vsel %vm1004_vm2, %v1000_v30, %v3246_v48 }
 0x326   : > { %v693_v42 = vpop.permute.xlu1 %692  ;;  %v1061_v51 = vsel %vm1034_vm3, %v1029_v3, %v3218_v61  ;;  %v699_v61 = vpop.permute.xlu0 %698  ;;  %v1062_v17 = vsel %vm1034_vm3, %v1030_v57, %v3264_v54 }
 0x327   : > { %v1126_v56 = vsel %vm1099_vm5, %v1093_v11, %v693_v42  ;;  %v1677_v13 = vadd.f32 %v1676_v15, %v1675_v31  ;;  %v1094_v62 = vsel %vm1066_vm4, %v1061_v51, %v599_v50  ;;  %v1095_v29 = vsel %vm1066_vm4, %v1062_v17, %v601_v47  ;;  %v3618_v42 = vld [vmem:[#allocation37_spill] sm:$0xff] }
 0x328   : > { %v1159_v4 = vsel %vm1132_vm6, %v1126_v56, %v786_v7  ;;  %v1128_v38 = vsel %vm1099_vm5, %v1095_v29, %v697_v10  ;;  %v1002_v56 = vsel %vm976_vm1, %v2155_v25, %v3618_v42 }
 0x329   : > { %v1192_v24 = vsel %vm1165_vm7, %v1159_v4, %v3293_v33 }
 0x32a   : > { %v695_v60 = vpop.permute.xlu1 %694  ;;  %v1225_v46 = vsel %vm1198_vm8, %v1192_v24, %v3275_v27  ;;  %v417_v53 = vpop.permute.xlu0 %416 }
 0x32b   : > { %1987 = vmatprep.mubr.msk.f32.mxu1 %vm1236_vm9, %v1225_v46  ;;  %v1127_v14 = vsel %vm1099_vm5, %v1094_v62, %v695_v60 }
 0x32e   : > { %v413_v1 = vpop.permute.xlu1 %412  ;;  %v510_v31 = vpop.permute.xlu0 %509 }
 0x32f   : > { %v1031_v32 = vsel %vm1004_vm2, %v1001_v5, %v413_v1 }
 0x332   : > { %v788_v0 = vpop.permute.xlu1 %787  ;;  %v607_v24 = vpop.permute.xlu0 %606 }
 0x333   : > { %v1160_v37 = vsel %vm1132_vm6, %v1127_v14, %v788_v0 }
 0x334   : > { %v1193_v22 = vsel %vm1165_vm7, %v1160_v37, %v3293_v33 }
 0x335   : > { %v1226_v8 = vsel %vm1198_vm8, %v1193_v22, %v3275_v27 }
 0x336   : > { %v506_v12 = vpop.permute.xlu1 %505  ;;  %1988 = vmatmul.mubr.msk.f32.gmra.mrb[10].mxu1 %vm1236_vm9, %v1226_v8 }
 0x337   : > { %v1063_v2 = vsel %vm1034_vm3, %v1031_v32, %v506_v12 }
 0x338   : > { %v1962_v55 = vpop.f32.mrb[8].mxu0 }
 0x339   : > { %1745 = vst.msk [vmem:[%s3129_s14 + $0x48] sm:$0xff] %vm1004_vm2, %v1962_v55  ;;  %v1443_v50 = vpop.f32.mrb[9].mxu0  ;;  %v1640_v28 = vmul.f32 %v1962_v55, %v1962_v55  ;;  %v1579_v40 = vsel %vm1004_vm2, %v1962_v55, 0.0 }
 0x33a   : > { %v1577_v20 = vsel %vm1004_vm2, %v1443_v50, 0.0  ;;  %v1639_v7 = vmul.f32 %v1443_v50, %v1443_v50  ;;  %1744 = vst.msk [vmem:[%s3129_s14 + $0x40] sm:$0xff] %vm1004_vm2, %v1443_v50  ;;  %v603_v39 = vpop.permute.xlu1 %602 }
 0x33b   : > { %v1578_v44 = vadd.f32 %v1577_v20, %v1576_v21  ;;  %v1680_v18 = vsel %vm1004_vm2, %v1640_v28, 0.0  ;;  %v1096_v9 = vsel %vm1066_vm4, %v1063_v2, %v603_v39 }
 0x33c   : > { %v1678_v19 = vsel %vm1004_vm2, %v1639_v7, 0.0  ;;  %v1129_v23 = vsel %vm1099_vm5, %v1096_v9, %v699_v61 }
 0x33d   : > { %v1679_v59 = vadd.f32 %v1678_v19, %v1677_v13  ;;  %v1580_v16 = vadd.f32 %v1579_v40, %v1578_v44  ;;  %v3619_v13 = vld [vmem:[#allocation39_spill] sm:$0xff] }
 0x33e   : > { %v415_v35 = vpop.permute.xlu1 %414  ;;  %v1003_v4 = vsel %vm976_vm1, %v2159_v26, %v3619_v13 }
 0x33f   : > { %v1681_v49 = vadd.f32 %v1680_v18, %v1679_v59  ;;  %v1033_v60 = vsel %vm1004_vm2, %v1003_v4, %v417_v53  ;;  %v1032_v46 = vsel %vm1004_vm2, %v1002_v56, %v415_v35 }
 0x340   : > { %v1065_v41 = vsel %vm1034_vm3, %v1033_v60, %v510_v31 }
 0x341   : > { %v1098_v47 = vsel %vm1066_vm4, %v1065_v41, %v607_v24 }
 0x342   : > { %v790_v63 = vpop.permute.xlu1 %789 }
 0x343   : > { %v1161_v58 = vsel %vm1132_vm6, %v1128_v38, %v790_v63  ;;  %v1162_v52 = vsel %vm1132_vm6, %v1129_v23, %v790_v63 }
 0x344   : > { %v1194_v48 = vsel %vm1165_vm7, %v1161_v58, %v3293_v33  ;;  %v1195_v45 = vsel %vm1165_vm7, %v1162_v52, %v3293_v33 }
 0x345   : > { %v1227_v54 = vsel %vm1198_vm8, %v1194_v48, %v3275_v27  ;;  %v1228_v21 = vsel %vm1198_vm8, %v1195_v45, %v3275_v27 }
 0x346   : > { %v508_v11 = vpop.permute.xlu1 %507  ;;  %1990 = vmatprep.mubr.msk.f32.mxu1 %vm1236_vm9, %v1227_v54 }
 0x347   : > { %1991 = vmatmul.mubr.msk.f32.gmra.mrb[12].mxu1 %vm1236_vm9, %v1228_v21  ;;  %v1064_v6 = vsel %vm1034_vm3, %v1032_v46, %v508_v11 }
 0x34a   : > { %v605_v15 = vpop.permute.xlu1 %604 }
 0x34b   : > { %v1097_v1 = vsel %vm1066_vm4, %v1064_v6, %v605_v15 }
 0x34e   : > { %v701_v25 = vpop.permute.xlu1 %700 }
 0x34f   : > { %v1130_v34 = vsel %vm1099_vm5, %v1097_v1, %v701_v25  ;;  %v1131_v3 = vsel %vm1099_vm5, %v1098_v47, %v701_v25 }
 0x350   : > { %v1163_v26 = vsel %vm1132_vm6, %v1130_v34, %v790_v63  ;;  %v1164_v51 = vsel %vm1132_vm6, %v1131_v3, %v790_v63  ;;  %v1965_v62 = vpop.f32.mrb[10].mxu0 }
 0x351   : > { %v1642_v14 = vmul.f32 %v1965_v62, %v1965_v62  ;;  %1747 = vst.msk [vmem:[%s3129_s14 + $0x58] sm:$0xff] %vm1004_vm2, %v1965_v62  ;;  %v1453_v0 = vpop.f32.mrb[11].mxu0  ;;  %v1196_v10 = vsel %vm1165_vm7, %v1163_v26, %v3293_v33  ;;  %v1197_v37 = vsel %vm1165_vm7, %v1164_v51, %v3293_v33  ;;  %v1583_v50 = vsel %vm1004_vm2, %v1965_v62, 0.0 }
 0x352   : > { %v1581_v22 = vsel %vm1004_vm2, %v1453_v0, 0.0  ;;  %v1641_v8 = vmul.f32 %v1453_v0, %v1453_v0  ;;  %1746 = vst.msk [vmem:[%s3129_s14 + $0x50] sm:$0xff] %vm1004_vm2, %v1453_v0  ;;  %v1229_v12 = vsel %vm1198_vm8, %v1196_v10, %v3275_v27  ;;  %v1230_v55 = vsel %vm1198_vm8, %v1197_v37, %v3275_v27 }
 0x353   : > { %v1582_v61 = vadd.f32 %v1581_v22, %v1580_v16  ;;  %1993 = vmatprep.mubr.msk.f32.mxu1 %vm1236_vm9, %v1229_v12  ;;  %v1684_v7 = vsel %vm1004_vm2, %v1642_v14, 0.0 }
 0x354   : > { %v1682_v33 = vsel %vm1004_vm2, %v1641_v8, 0.0  ;;  %1994 = vmatmul.mubr.msk.f32.gmra.mrb[14].mxu1 %vm1236_vm9, %v1230_v55 }
 0x355   : > { %v1683_v28 = vadd.f32 %v1682_v33, %v1681_v49  ;;  %v1584_v20 = vadd.f32 %v1583_v50, %v1582_v61 }
 0x357   : > { %v1685_v39 = vadd.f32 %v1684_v7, %v1683_v28 }
 0x368   : > { %v1968_v44 = vpop.f32.mrb[12].mxu0 }
 0x369   : > { %1749 = vst.msk [vmem:[%s3129_s14 + $0x68] sm:$0xff] %vm1004_vm2, %v1968_v44  ;;  %v1463_v27 = vpop.f32.mrb[13].mxu0  ;;  %v1644_v43 = vmul.f32 %v1968_v44, %v1968_v44  ;;  %v1587_v32 = vsel %vm1004_vm2, %v1968_v44, 0.0 }
 0x36a   : > { %v1585_v5 = vsel %vm1004_vm2, %v1463_v27, 0.0  ;;  %v1643_v40 = vmul.f32 %v1463_v27, %v1463_v27  ;;  %1748 = vst.msk [vmem:[%s3129_s14 + $0x60] sm:$0xff] %vm1004_vm2, %v1463_v27 }
 0x36b   : > { %v1586_v19 = vadd.f32 %v1585_v5, %v1584_v20  ;;  %v1688_v30 = vsel %vm1004_vm2, %v1644_v43, 0.0 }
 0x36c   : > { %v1686_v59 = vsel %vm1004_vm2, %v1643_v40, 0.0 }
 0x36d   : > { %v1687_v16 = vadd.f32 %v1686_v59, %v1685_v39  ;;  %v1588_v36 = vadd.f32 %v1587_v32, %v1586_v19 }
 0x36f   : > { %v1689_v2 = vadd.f32 %v1688_v30, %v1687_v16 }
 0x380   : > { %v1971_v18 = vpop.f32.mrb[14].mxu0 }
 0x381   : > { %1751 = vst.msk [vmem:[%s3129_s14 + $0x78] sm:$0xff] %vm1004_vm2, %v1971_v18  ;;  %v1473_v35 = vpop.f32.mrb[15].mxu0  ;;  %v1646_v57 = vmul.f32 %v1971_v18, %v1971_v18  ;;  %v1591_v17 = vsel %vm1004_vm2, %v1971_v18, 0.0 }
 0x382   : > { %v1589_v53 = vsel %vm1004_vm2, %v1473_v35, 0.0  ;;  %v1645_v9 = vmul.f32 %v1473_v35, %v1473_v35  ;;  %1750 = vst.msk [vmem:[%s3129_s14 + $0x70] sm:$0xff] %vm1004_vm2, %v1473_v35 }
 0x383   : > { %v1590_v49 = vadd.f32 %v1589_v53, %v1588_v36  ;;  %v1692_v63 = vsel %vm1004_vm2, %v1646_v57, 0.0 }
 0x384   : > { %v1690_v29 = vsel %vm1004_vm2, %v1645_v9, 0.0 }
 0x385   : > { %v1592_v38 = vadd.f32 %v1591_v17, %v1590_v49  ;;  %v1691_v23 = vadd.f32 %v1690_v29, %v1689_v2 }
 0x387   : > { %v1693_v58 = vadd.f32 %v1692_v63, %v1691_v23 }
 0x398   : > { %v1974_v52 = vpop.f32.mrb[0].mxu1 }
 0x399   : > { %1753 = vst.msk [vmem:[%s3129_s14 + $0x88] sm:$0xff] %vm1004_vm2, %v1974_v52  ;;  %v1483_v48 = vpop.f32.mrb[1].mxu1  ;;  %v1648_v45 = vmul.f32 %v1974_v52, %v1974_v52  ;;  %v1595_v11 = vsel %vm1004_vm2, %v1974_v52, 0.0 }
 0x39a   : > { %v1593_v31 = vsel %vm1004_vm2, %v1483_v48, 0.0  ;;  %v1647_v54 = vmul.f32 %v1483_v48, %v1483_v48  ;;  %1752 = vst.msk [vmem:[%s3129_s14 + $0x80] sm:$0xff] %vm1004_vm2, %v1483_v48 }
 0x39b   : > { %v1594_v21 = vadd.f32 %v1593_v31, %v1592_v38  ;;  %v1696_v13 = vsel %vm1004_vm2, %v1648_v45, 0.0 }
 0x39c   : > { %v1694_v15 = vsel %vm1004_vm2, %v1647_v54, 0.0 }
 0x39d   : > { %v1695_v42 = vadd.f32 %v1694_v15, %v1693_v58  ;;  %v1596_v56 = vadd.f32 %v1595_v11, %v1594_v21 }
 0x39f   : > { %v1697_v4 = vadd.f32 %v1696_v13, %v1695_v42 }
 0x3b0   : > { %v1977_v24 = vpop.f32.mrb[2].mxu1 }
 0x3b1   : > { %1755 = vst.msk [vmem:[%s3129_s14 + $0x98] sm:$0xff] %vm1004_vm2, %v1977_v24  ;;  %v1493_v60 = vpop.f32.mrb[3].mxu1  ;;  %v1650_v46 = vmul.f32 %v1977_v24, %v1977_v24  ;;  %v1599_v1 = vsel %vm1004_vm2, %v1977_v24, 0.0 }
 0x3b2   : > { %v1597_v41 = vsel %vm1004_vm2, %v1493_v60, 0.0  ;;  %v1649_v6 = vmul.f32 %v1493_v60, %v1493_v60  ;;  %1754 = vst.msk [vmem:[%s3129_s14 + $0x90] sm:$0xff] %vm1004_vm2, %v1493_v60 }
 0x3b3   : > { %v1598_v47 = vadd.f32 %v1597_v41, %v1596_v56  ;;  %v1700_v26 = vsel %vm1004_vm2, %v1650_v46, 0.0 }
 0x3b4   : > { %v1698_v25 = vsel %vm1004_vm2, %v1649_v6, 0.0 }
 0x3b5   : > { %v1699_v34 = vadd.f32 %v1698_v25, %v1697_v4  ;;  %v1600_v3 = vadd.f32 %v1599_v1, %v1598_v47 }
 0x3b7   : > { %v1701_v51 = vadd.f32 %v1700_v26, %v1699_v34 }
 0x3c8   : > { %v1980_v62 = vpop.f32.mrb[4].mxu1 }
 0x3c9   : > { %1757 = vst.msk [vmem:[%s3129_s14 + $0xa8] sm:$0xff] %vm1004_vm2, %v1980_v62  ;;  %v1503_v14 = vpop.f32.mrb[5].mxu1  ;;  %v1652_v0 = vmul.f32 %v1980_v62, %v1980_v62  ;;  %v1603_v8 = vsel %vm1004_vm2, %v1980_v62, 0.0 }
 0x3ca   : > { %v1601_v10 = vsel %vm1004_vm2, %v1503_v14, 0.0  ;;  %v1651_v37 = vmul.f32 %v1503_v14, %v1503_v14  ;;  %1756 = vst.msk [vmem:[%s3129_s14 + $0xa0] sm:$0xff] %vm1004_vm2, %v1503_v14 }
 0x3cb   : > { %v1602_v22 = vadd.f32 %v1601_v10, %v1600_v3  ;;  %v1704_v50 = vsel %vm1004_vm2, %v1652_v0, 0.0 }
 0x3cc   : > { %v1702_v12 = vsel %vm1004_vm2, %v1651_v37, 0.0 }
 0x3cd   : > { %v1703_v55 = vadd.f32 %v1702_v12, %v1701_v51  ;;  %v1604_v61 = vadd.f32 %v1603_v8, %v1602_v22 }
 0x3cf   : > { %v1705_v33 = vadd.f32 %v1704_v50, %v1703_v55 }
 0x3e0   : > { %v1983_v28 = vpop.f32.mrb[6].mxu1 }
 0x3e1   : > { %1759 = vst.msk [vmem:[%s3129_s14 + $0xb8] sm:$0xff] %vm1004_vm2, %v1983_v28  ;;  %v1513_v20 = vpop.f32.mrb[7].mxu1  ;;  %v1654_v7 = vmul.f32 %v1983_v28, %v1983_v28  ;;  %v1607_v43 = vsel %vm1004_vm2, %v1983_v28, 0.0 }
 0x3e2   : > { %v1605_v39 = vsel %vm1004_vm2, %v1513_v20, 0.0  ;;  %v1653_v44 = vmul.f32 %v1513_v20, %v1513_v20  ;;  %1758 = vst.msk [vmem:[%s3129_s14 + $0xb0] sm:$0xff] %vm1004_vm2, %v1513_v20 }
 0x3e3   : > { %v1606_v27 = vadd.f32 %v1605_v39, %v1604_v61  ;;  %v1708_v32 = vsel %vm1004_vm2, %v1654_v7, 0.0 }
 0x3e4   : > { %v1706_v5 = vsel %vm1004_vm2, %v1653_v44, 0.0 }
 0x3e5   : > { %v1707_v40 = vadd.f32 %v1706_v5, %v1705_v33  ;;  %v1608_v19 = vadd.f32 %v1607_v43, %v1606_v27 }
 0x3e7   : > { %v1709_v59 = vadd.f32 %v1708_v32, %v1707_v40 }
 0x3f8   : > { %v1986_v16 = vpop.f32.mrb[8].mxu1 }
 0x3f9   : > { %1761 = vst.msk [vmem:[%s3129_s14 + $0xc8] sm:$0xff] %vm1004_vm2, %v1986_v16  ;;  %v1523_v36 = vpop.f32.mrb[9].mxu1  ;;  %v1656_v30 = vmul.f32 %v1986_v16, %v1986_v16  ;;  %v1611_v57 = vsel %vm1004_vm2, %v1986_v16, 0.0 }
 0x3fa   : > { %v1609_v2 = vsel %vm1004_vm2, %v1523_v36, 0.0  ;;  %v1655_v18 = vmul.f32 %v1523_v36, %v1523_v36  ;;  %1760 = vst.msk [vmem:[%s3129_s14 + $0xc0] sm:$0xff] %vm1004_vm2, %v1523_v36 }
 0x3fb   : > { %v1610_v35 = vadd.f32 %v1609_v2, %v1608_v19  ;;  %v1712_v17 = vsel %vm1004_vm2, %v1656_v30, 0.0 }
 0x3fc   : > { %v1710_v53 = vsel %vm1004_vm2, %v1655_v18, 0.0 }
 0x3fd   : > { %v1711_v9 = vadd.f32 %v1710_v53, %v1709_v59  ;;  %v1612_v49 = vadd.f32 %v1611_v57, %v1610_v35 }
 0x3ff   : > { %v1713_v29 = vadd.f32 %v1712_v17, %v1711_v9 }
 0x409   : > { %v1989_v38 = vpop.f32.mrb[10].mxu1 }
 0x40a   : > { %1763 = vst.msk [vmem:[%s3129_s14 + $0xd8] sm:$0xff] %vm1004_vm2, %v1989_v38  ;;  %v1533_v23 = vpop.f32.mrb[11].mxu1  ;;  %v1658_v63 = vmul.f32 %v1989_v38, %v1989_v38  ;;  %v1615_v45 = vsel %vm1004_vm2, %v1989_v38, 0.0 }
 0x40b   : > { %v1613_v58 = vsel %vm1004_vm2, %v1533_v23, 0.0  ;;  %v1657_v52 = vmul.f32 %v1533_v23, %v1533_v23  ;;  %1762 = vst.msk [vmem:[%s3129_s14 + $0xd0] sm:$0xff] %vm1004_vm2, %v1533_v23 }
 0x40c   : > { %v1614_v48 = vadd.f32 %v1613_v58, %v1612_v49  ;;  %v1716_v11 = vsel %vm1004_vm2, %v1658_v63, 0.0 }
 0x40d   : > { %v1714_v31 = vsel %vm1004_vm2, %v1657_v52, 0.0 }
 0x40e   : > { %v1715_v54 = vadd.f32 %v1714_v31, %v1713_v29  ;;  %v1616_v21 = vadd.f32 %v1615_v45, %v1614_v48 }
 0x410   : > { %v1717_v15 = vadd.f32 %v1716_v11, %v1715_v54 }
 0x41a   : > { %v1992_v42 = vpop.f32.mrb[12].mxu1 }
 0x41b   : > { %1765 = vst.msk [vmem:[%s3129_s14 + $0xe8] sm:$0xff] %vm1004_vm2, %v1992_v42  ;;  %v1543_v56 = vpop.f32.mrb[13].mxu1  ;;  %v1660_v13 = vmul.f32 %v1992_v42, %v1992_v42  ;;  %v1619_v46 = vsel %vm1004_vm2, %v1992_v42, 0.0 }
 0x41c   : > { %v1617_v4 = vsel %vm1004_vm2, %v1543_v56, 0.0  ;;  %v1659_v24 = vmul.f32 %v1543_v56, %v1543_v56  ;;  %1764 = vst.msk [vmem:[%s3129_s14 + $0xe0] sm:$0xff] %vm1004_vm2, %v1543_v56 }
 0x41d   : > { %v1618_v60 = vadd.f32 %v1617_v4, %v1616_v21  ;;  %v1720_v1 = vsel %vm1004_vm2, %v1660_v13, 0.0 }
 0x41e   : > { %v1718_v41 = vsel %vm1004_vm2, %v1659_v24, 0.0 }
 0x41f   : > { %v1719_v6 = vadd.f32 %v1718_v41, %v1717_v15  ;;  %v1620_v47 = vadd.f32 %v1619_v46, %v1618_v60 }
 0x421   : > { %v1721_v25 = vadd.f32 %v1720_v1, %v1719_v6 }
 0x427   : > { %v1995_v34 = vpop.f32.mrb[14].mxu1 }
 0x428   : > { %1767 = vst.msk [vmem:[%s3129_s14 + $0xf8] sm:$0xff] %vm1004_vm2, %v1995_v34  ;;  %v1553_v3 = vpop.f32.mrb[15].mxu1  ;;  %v1662_v26 = vmul.f32 %v1995_v34, %v1995_v34  ;;  %v1623_v0 = vsel %vm1004_vm2, %v1995_v34, 0.0 }
 0x429   : > { %v1621_v51 = vsel %vm1004_vm2, %v1553_v3, 0.0  ;;  %v1661_v62 = vmul.f32 %v1553_v3, %v1553_v3  ;;  %1766 = vst.msk [vmem:[%s3129_s14 + $0xf0] sm:$0xff] %vm1004_vm2, %v1553_v3 }
 0x42a   : > { %v1622_v14 = vadd.f32 %v1621_v51, %v1620_v47  ;;  %v1724_v8 = vsel %vm1004_vm2, %v1662_v26, 0.0 }
 0x42b   : > { %v1722_v10 = vsel %vm1004_vm2, %v1661_v62, 0.0 }
 0x42c   : > { %v1624_v37 = vadd.f32 %v1623_v0, %v1622_v14  ;;  %v1723_v22 = vadd.f32 %v1722_v10, %v1721_v25 }
 0x42e   : > { %v1625_v12 = vrot.slane %v1624_v37, 4  ;;  %v1725_v55 = vadd.f32 %v1724_v8, %v1723_v22 }
 0x430   : > { %v1626_v61 = vadd.f32 %v1625_v12, %v1624_v37  ;;  %v1726_v50 = vrot.slane %v1725_v55, 4 }
 0x432   : > { %v1627_v33 = vrot.slane %v1626_v61, 2  ;;  %v1727_v28 = vadd.f32 %v1726_v50, %v1725_v55 }
 0x434   : > { %v1628_v20 = vadd.f32 %v1627_v33, %v1626_v61  ;;  %v1728_v7 = vrot.slane %v1727_v28, 2 }
 0x436   : > { %v1629_v39 = vrot.slane %v1628_v20, 1  ;;  %v1729_v44 = vadd.f32 %v1728_v7, %v1727_v28 }
 0x438   : > { %v1730_v27 = vrot.slane %v1729_v44, 1  ;;  %v1630_v43 = vadd.f32 %v1629_v39, %v1628_v20 }
 0x43a   : > { %v1731_v5 = vadd.f32 %v1730_v27, %v1729_v44 }
 0x43c   : > { %v1733_v40 = vsel %vm1732_vm10, %v1630_v43, %v1731_v5 }
 0x43d   : > { %1735 = vst.msk [vmem:[%s181_s18] sm:$0x3] %vm1734_vm11, %v1733_v40 }
 0x43e PF: > { %s14_s12 = sadd.s32 1, %s2034_s12  }
 0x43f   : > { %p11_p4 = scmp.ge.s32.totalorder %s14_s12, 4  }
 0x441   :  { %13 = sbr.rel (!%p11_p4) target bundleno = 1 (0x1), region = 70 }

</bundles_post_ra>
